<compile_context>
chip_gen: v7x
topology: tpu7x:2x2x1
jax: 0.10.0
libtpu: 0.0.40
codegen_flags: <defaults>
</compile_context>

<pallas_src>
import jax
import jax.numpy as jnp
from jax.experimental import pallas as pl
from jax.experimental.pallas import tpu as pltpu


def _expert_kernel(x_ref, w1t_ref, b1_ref, w2t_ref, b2_ref, o_ref):
    # x_ref: (TN, C, HW). Lane-dense reduce over the last axis; the 1/(H*W)
    # averaging factor is already folded into w1t.
    pooled = jnp.sum(x_ref[...], axis=-1).astype(jnp.float32)        # (TN, C)

    # Linear(C -> 128): y = pooled @ (W1^T / HW) + b1
    h = jnp.dot(pooled, w1t_ref[...], preferred_element_type=jnp.float32)
    h = h + b1_ref[...]                                              # (1, 128) broadcast

    # ReLU
    h = jnp.maximum(h, 0.0)

    # Dropout(0.3): eval-mode identity (no-op).

    # Linear(128 -> K_pad): y = h @ W2^T (zero-padded to 128 lanes) + b2
    out = jnp.dot(h, w2t_ref[...], preferred_element_type=jnp.float32)
    out = out + b2_ref[...]                                          # (1, K_pad)

    o_ref[...] = out.astype(o_ref.dtype)


def classification_expert_forward(x, w1, b1, w2, b2):
    """x: (N, C, H, W). w1: (128, C), b1: (128,), w2: (K, 128), b2: (K,)."""
    n, c, h, w = x.shape
    hw = h * w
    hidden = w1.shape[0]
    k = w2.shape[0]

    # ---- wrapper-side layout glue -------------------------------------------------
    # Lane-dense view of x: pooling reduces over the last (H*W) axis.
    x3 = x.reshape(n, c, hw)

    # Fold the average's 1/(H*W) into the pre-transposed first weight.
    w1t = (jnp.transpose(w1) / jnp.asarray(hw, w1.dtype)).astype(jnp.float32)  # (C, 128)
    b1_2d = b1.reshape(1, hidden).astype(jnp.float32)

    # Pad the class dimension up to a multiple of 128 lanes (zero columns -> exact).
    k_pad = max(128, pl.cdiv(k, 128) * 128)
    w2t = jnp.transpose(w2).astype(jnp.float32)                                # (128, K)
    w2t_p = jnp.zeros((hidden, k_pad), jnp.float32).at[:, :k].set(w2t)
    b2_p = jnp.zeros((1, k_pad), jnp.float32).at[0, :k].set(b2.astype(jnp.float32))

    # Batch tile: multiple of 8, capped so one x tile stays ~<=2 MiB
    # (2x double-buffering + resident weights fit even v5e's 16 MiB scoped VMEM;
    #  re-derived automatically for any C/H*W, so it is also safe on v7x's 64 MiB).
    bytes_per_row = c * hw * x3.dtype.itemsize
    tn = int(min(128, max(8, (2 * 1024 * 1024) // max(1, bytes_per_row))))
    tn = max(8, (tn // 8) * 8)

    n_pad = pl.cdiv(n, tn) * tn
    if n_pad != n:
        x3 = jnp.pad(x3, ((0, n_pad - n), (0, 0), (0, 0)))

    grid = (n_pad // tn,)

    out_padded = pl.pallas_call(
        _expert_kernel,
        out_shape=jax.ShapeDtypeStruct((n_pad, k_pad), jnp.float32),
        grid_spec=pltpu.PrefetchScalarGridSpec(
            num_scalar_prefetch=0,
            grid=grid,
            in_specs=[
                # x: one batch tile per grid step (double-buffered by Pallas).
                pl.BlockSpec((tn, c, hw), lambda i: (i, 0, 0)),
                # weights/biases: constant index_map -> VMEM-resident across steps.
                pl.BlockSpec((c, hidden), lambda i: (0, 0)),
                pl.BlockSpec((1, hidden), lambda i: (0, 0)),
                pl.BlockSpec((hidden, k_pad), lambda i: (0, 0)),
                pl.BlockSpec((1, k_pad), lambda i: (0, 0)),
            ],
            out_specs=pl.BlockSpec((tn, k_pad), lambda i: (i, 0)),
        ),
        compiler_params=pltpu.CompilerParams(
            dimension_semantics=("parallel",),  # shards batch tiles across v7x's 2 TCs
        ),
    )(x3, w1t, b1_2d, w2t_p, b2_p)

    # Strip batch padding and class-lane padding outside the kernel.
    return out_padded[:n, :k]


def _reference_forward(x, w1, b1, w2, b2):
    pooled = jnp.mean(x, axis=(2, 3))
    h = jnp.maximum(pooled @ w1.T + b1, 0.0)
    return h @ w2.T + b2


if __name__ == "__main__":
    key = jax.random.PRNGKey(0)
    k_x, k_w1, k_b1, k_w2, k_b2 = jax.random.split(key, 5)

    # Small shapes consistent with the module's forward.
    N, C, H, W = 2, 4, 16, 16
    HIDDEN, NUM_CLASSES = 128, 10

    x = jax.random.normal(k_x, (N, C, H, W), dtype=jnp.float32)

    # Deterministic parameter init (roughly PyTorch-Linear-like uniform ranges).
    bound1 = 1.0 / (C ** 0.5)
    w1 = jax.random.uniform(k_w1, (HIDDEN, C), jnp.float32, -bound1, bound1)
    b1 = jax.random.uniform(k_b1, (HIDDEN,), jnp.float32, -bound1, bound1)
    bound2 = 1.0 / (HIDDEN ** 0.5)
    w2 = jax.random.uniform(k_w2, (NUM_CLASSES, HIDDEN), jnp.float32, -bound2, bound2)
    b2 = jax.random.uniform(k_b2, (NUM_CLASSES,), jnp.float32, -bound2, bound2)

    out = classification_expert_forward(x, w1, b1, w2, b2)
    out = jax.block_until_ready(out)

    ref = _reference_forward(x, w1, b1, w2, b2)
    assert out.shape == (N, NUM_CLASSES), out.shape
    assert jnp.allclose(out, ref, atol=1e-4, rtol=1e-4), "mismatch vs reference"

    print("KERNEL_OK")
</pallas_src>

<mosaic_0001>
module attributes {stable_mosaic.version = 11 : i64} {
  func.func @_expert_kernel(%arg0: i32, %arg1: memref<128x4x256xf32, #tpu.memory_space<vmem>>, %arg2: memref<4x128xf32, #tpu.memory_space<vmem>>, %arg3: memref<1x128xf32, #tpu.memory_space<vmem>>, %arg4: memref<128x128xf32, #tpu.memory_space<vmem>>, %arg5: memref<1x128xf32, #tpu.memory_space<vmem>>, %arg6: memref<128x128xf32, #tpu.memory_space<vmem>>) attributes {dimension_semantics = [#tpu.dimension_semantics<parallel>], iteration_bounds = array<i64: 1>, scalar_prefetch = 0 : i64, scratch_operands = 0 : i64, tpu.core_type = #tpu.core_type<tc>, window_params = [{transform_indices = @transform_0, window_bounds = array<i64: 128, 4, 256>}, {pipeline_mode = #tpu.pipeline_mode<synchronous>, transform_indices = @transform_1, window_bounds = array<i64: 4, 128>}, {pipeline_mode = #tpu.pipeline_mode<synchronous>, transform_indices = @transform_2, window_bounds = array<i64: 1, 128>}, {pipeline_mode = #tpu.pipeline_mode<synchronous>, transform_indices = @transform_3, window_bounds = array<i64: 128, 128>}, {pipeline_mode = #tpu.pipeline_mode<synchronous>, transform_indices = @transform_4, window_bounds = array<i64: 1, 128>}, {transform_indices = @transform_5, window_bounds = array<i64: 128, 128>}]} {
    %c0 = arith.constant 0 : index
    %c0_0 = arith.constant 0 : index
    %c0_1 = arith.constant 0 : index
    %0 = vector.load %arg1[%c0, %c0_0, %c0_1] : memref<128x4x256xf32, #tpu.memory_space<vmem>>, vector<128x4x256xf32>
    %cst = arith.constant dense<0.000000e+00> : vector<128x4xf32>
    %1 = vector.multi_reduction <add>, %0, %cst [2] : vector<128x4x256xf32> to vector<128x4xf32>
    %c0_2 = arith.constant 0 : index
    %c0_3 = arith.constant 0 : index
    %2 = vector.load %arg2[%c0_2, %c0_3] : memref<4x128xf32, #tpu.memory_space<vmem>>, vector<4x128xf32>
    %cst_4 = arith.constant dense<0.000000e+00> : vector<128x128xf32>
    %3 = tpu.matmul %1, %2, %cst_4 {dimension_numbers = #tpu.dot_dimension_numbers<[1], [0], [0], [1], [0, 0, 1, 1], [], []>} : vector<128x4xf32>, vector<4x128xf32>, vector<128x128xf32> -> vector<128x128xf32>
    %c0_5 = arith.constant 0 : index
    %c0_6 = arith.constant 0 : index
    %4 = vector.load %arg3[%c0_5, %c0_6] : memref<1x128xf32, #tpu.memory_space<vmem>>, vector<1x128xf32>
    %5 = vector.broadcast %4 : vector<1x128xf32> to vector<128x128xf32>
    %6 = arith.addf %3, %5 : vector<128x128xf32>
    %cst_7 = arith.constant 0.000000e+00 : f32
    %7 = vector.broadcast %cst_7 : f32 to vector<128x128xf32>
    %8 = arith.maximumf %6, %7 : vector<128x128xf32>
    %c0_8 = arith.constant 0 : index
    %c0_9 = arith.constant 0 : index
    %9 = vector.load %arg4[%c0_8, %c0_9] : memref<128x128xf32, #tpu.memory_space<vmem>>, vector<128x128xf32>
    %cst_10 = arith.constant dense<0.000000e+00> : vector<128x128xf32>
    %10 = tpu.matmul %8, %9, %cst_10 {dimension_numbers = #tpu.dot_dimension_numbers<[1], [0], [0], [1], [0, 0, 1, 1], [], []>} : vector<128x128xf32>, vector<128x128xf32>, vector<128x128xf32> -> vector<128x128xf32>
    %c0_11 = arith.constant 0 : index
    %c0_12 = arith.constant 0 : index
    %11 = vector.load %arg5[%c0_11, %c0_12] : memref<1x128xf32, #tpu.memory_space<vmem>>, vector<1x128xf32>
    %12 = vector.broadcast %11 : vector<1x128xf32> to vector<128x128xf32>
    %13 = arith.addf %10, %12 : vector<128x128xf32>
    %c0_13 = arith.constant 0 : index
    %c0_14 = arith.constant 0 : index
    %14 = vector.load %arg6[%c0_13, %c0_14] : memref<128x128xf32, #tpu.memory_space<vmem>>, vector<128x128xf32>
    tpu.vector_store %arg6[%c0_13, %c0_14], %13 {strides = array<i32>} : memref<128x128xf32, #tpu.memory_space<vmem>>, vector<128x128xf32>,
    return
  }
  func.func @transform_0(%arg0: i32) -> (i32, i32, i32) {
    %c0_i32 = arith.constant 0 : i32
    %c0_i32_0 = arith.constant 0 : i32
    %c0_i32_1 = arith.constant 0 : i32
    return %arg0, %c0_i32, %c0_i32_0 : i32, i32, i32
  }
  func.func @transform_1(%arg0: i32) -> (i32, i32) {
    %c0_i32 = arith.constant 0 : i32
    %c0_i32_0 = arith.constant 0 : i32
    %c0_i32_1 = arith.constant 0 : i32
    return %c0_i32, %c0_i32_0 : i32, i32
  }
  func.func @transform_2(%arg0: i32) -> (i32, i32) {
    %c0_i32 = arith.constant 0 : i32
    %c0_i32_0 = arith.constant 0 : i32
    %c0_i32_1 = arith.constant 0 : i32
    return %c0_i32, %c0_i32_0 : i32, i32
  }
  func.func @transform_3(%arg0: i32) -> (i32, i32) {
    %c0_i32 = arith.constant 0 : i32
    %c0_i32_0 = arith.constant 0 : i32
    %c0_i32_1 = arith.constant 0 : i32
    return %c0_i32, %c0_i32_0 : i32, i32
  }
  func.func @transform_4(%arg0: i32) -> (i32, i32) {
    %c0_i32 = arith.constant 0 : i32
    %c0_i32_0 = arith.constant 0 : i32
    %c0_i32_1 = arith.constant 0 : i32
    return %c0_i32, %c0_i32_0 : i32, i32
  }
  func.func @transform_5(%arg0: i32) -> (i32, i32) {
    %c0_i32 = arith.constant 0 : i32
    %c0_i32_0 = arith.constant 0 : i32
    return %arg0, %c0_i32 : i32, i32
  }
}

</mosaic_0001>

<bundles_post_ra>
// kernel: tpu_custom_call.1
= control target key start
LH: loop header
LB: loop body
LE: loop exit
PB: predicated region body
PF: predicated region fallthrough
CT: control target
= control target key end

     0   :  { %10 = vsyncpa [#allocation3], 0  ;;  %s3612_s0 = inlined_call_operand.hbm [shape: f32[128,4,256], index: 0, kind: input, shape index: {}]   ;;  %s3613_s1 = inlined_call_operand.hbm [shape: f32[4,128], index: 1, kind: input, shape index: {}]   ;;  %s3614_s2 = inlined_call_operand.vmem [shape: f32[1,128], index: 2, kind: input, shape index: {}]   ;;  %s3615_s3 = inlined_call_operand.hbm [shape: f32[128,128], index: 3, kind: input, shape index: {}]   ;;  %s3616_s4 = inlined_call_operand.vmem [shape: f32[1,128], index: 4, kind: input, shape index: {}]   ;;  %s3617_s5 = inlined_call_operand.hbm [shape: f32[128,128], index: 5, kind: output, shape index: {}]  }
   0x1   :  { %11 = vsyncpa [#allocation6], 0 }
   0x2   :  { %12 = vsyncpa [#allocation4], 0  ;;  %s2807_s18 = smov [#allocation5]   ;;  %s2808_s20 = smov [#allocation2]  }
   0x3   :  { %s31_s19 = sshll.u32 %s2807_s18, 4  ;;  %s18_s21 = sshll.u32 %s2808_s20, 4  ;;  %s32_s19 = int_to_ptr.vmem [resolvable:$true] %s31_s19  ;;  %s2843_s21 = int_to_ptr.vmem [resolvable:$true] %s18_s21 }
   0x4   :  { %s2713_s24 = scalar_lea.hbm %s3613_s1, 64 }
   0x5   :  { %p2714_p0 = scmp.ne.s32.totalorder %s3613_s1, %s2713_s24  ;;  %p2717_p1 = scmp.lt.u32.totalorder %s2713_s24, %s3613_s1 }
   0x7   :  { %p2719_p2 = pnand %p2717_p1, %p2714_p0 }
   0x9   :  { %2722 = shalt.err (!%p2719_p2)
}
   0xa   :  { %s2723_s29 = scalar_lea.vmem %s32_s19, 64  ;;  %p2728_p4 = scmp.lt.s32.totalorder %s32_s19, %s32_s19 }
   0xb   :  { %p2724_p3 = scmp.ne.s32.totalorder %s32_s19, %s2723_s29  ;;  %p2729_p5 = scmp.lt.s32.totalorder %s2723_s29, %s2723_s29 }
   0xd   :  { %p2730_p6 = por %p2729_p5, %p2728_p4 }
   0xf   :  { %p2731_p7 = pnand %p2730_p6, %p2724_p3 }
  0x11   :  { %2734 = shalt.err (!%p2731_p7)
}
  0x12   :  { %34 = dma.hbm_to_vmem [thread:$0]  %s3613_s1, 64, %s32_s19, [#allocation6]  }
  0x13   :  { %s2735_s9 = scalar_lea.hbm %s3612_s0, 16384 }
  0x14   :  { %p2736_p8 = scmp.ne.s32.totalorder %s3612_s0, %s2735_s9  ;;  %p2739_p9 = scmp.lt.u32.totalorder %s2735_s9, %s3612_s0 }
  0x16   :  { %p2741_p10 = pnand %p2739_p9, %p2736_p8 }
  0x18   :  { %2744 = shalt.err (!%p2741_p10)
}
  0x19   :  { %s2745_s14 = scalar_lea.vmem %s2843_s21, 16384  ;;  %p2750_p12 = scmp.lt.s32.totalorder %s2843_s21, %s2843_s21 }
  0x1a   :  { %p2746_p11 = scmp.ne.s32.totalorder %s2843_s21, %s2745_s14  ;;  %p2751_p13 = scmp.lt.s32.totalorder %s2745_s14, %s2745_s14 }
  0x1c   :  { %p2752_p0 = por %p2751_p13, %p2750_p12 }
  0x1e   :  { %p2753_p1 = pnand %p2752_p0, %p2746_p11 }
  0x20   :  { %2756 = shalt.err (!%p2753_p1)
}
  0x21   :  { %s2809_s1 = smov 128   ;;  %s2810_s15 = smov 8  }
  0x22   :  { %24 = dma.hbm_to_vmem [thread:$0]  %s3612_s0, 16384, %s2843_s21, [#allocation3], %s2809_s1, %s2809_s1, %s2810_s15  }
  0x23   :  { %s2811_s18 = smov [#allocation7]   ;;  %s2757_s23 = scalar_lea.hbm %s3615_s3, 2048 }
  0x24   :  { %s42_s19 = sshll.u32 %s2811_s18, 4  ;;  %p2758_p2 = scmp.ne.s32.totalorder %s3615_s3, %s2757_s23  ;;  %s43_s19 = int_to_ptr.vmem [resolvable:$true] %s42_s19 }
  0x25   :  { %p2761_p3 = scmp.lt.u32.totalorder %s2757_s23, %s3615_s3 }
  0x27   :  { %p2763_p4 = pnand %p2761_p3, %p2758_p2 }
  0x29   :  { %2766 = shalt.err (!%p2763_p4)
}
  0x2a   :  { %s2767_s28 = scalar_lea.vmem %s43_s19, 2048  ;;  %p2772_p6 = scmp.lt.s32.totalorder %s43_s19, %s43_s19 }
  0x2b   :  { %p2768_p5 = scmp.ne.s32.totalorder %s43_s19, %s2767_s28  ;;  %p2773_p7 = scmp.lt.s32.totalorder %s2767_s28, %s2767_s28 }
  0x2d   :  { %p2774_p8 = por %p2773_p7, %p2772_p6 }
  0x2f   :  { %p2775_p9 = pnand %p2774_p8, %p2768_p5 }
  0x31   :  { %2778 = shalt.err (!%p2775_p9)
}
  0x32   :  { %48 = dma.hbm_to_vmem [thread:$0]  %s3615_s3, 2048, %s43_s19, [#allocation6], %s2809_s1, %s2809_s1, %s2810_s15  }
  0x33   :  { %2801 = dma.done.wait [#allocation3], 16384  }
  0x34   :  { %2802 = vsyncadd [#allocation3], 4294950912 }
  0x35   :  { %2803 = dma.done.wait [#allocation6], 2112  }
  0x36   :  { %2804 = vsyncadd [#allocation6], 4294965184  ;;  %vm572_vm0 = vcmask 1043456   ;;  %v62_v0 = vld [vmem:[#allocation2 + $0x10] sm:$0xff]  ;;  %v60_v1 = vld [vmem:[#allocation2] sm:$0xff]  ;;  %vm1863_vm1 = vcmask 1041409  }
  0x37   :  { %v68_v2 = vld [vmem:[#allocation2 + $0x40] sm:$0xff]  ;;  %v318_v3 = vcombine.high %v62_v0, %v62_v0  ;;  %v583_v4 = vsel %vm572_vm0, %v62_v0, 0.0  ;;  %v316_v5 = vcombine.high %v60_v1, %v60_v1  ;;  %v573_v6 = vsel %vm572_vm0, %v60_v1, 0.0  ;;  %v61_v7 = vld [vmem:[#allocation2 + $0x8] sm:$0xff]  ;;  %v63_v8 = vld [vmem:[#allocation2 + $0x18] sm:$0xff] }
  0x38   :  { %v324_v9 = vcombine.high %v68_v2, %v68_v2  ;;  %v613_v10 = vsel %vm572_vm0, %v68_v2, 0.0  ;;  %v317_v11 = vcombine.high %v61_v7, %v61_v7  ;;  %v69_v12 = vld [vmem:[#allocation2 + $0x48] sm:$0xff]  ;;  %v578_v15 = vsel %vm572_vm0, %v61_v7, 0.0  ;;  %v64_v21 = vld [vmem:[#allocation2 + $0x20] sm:$0xff]  ;;  %v70_v22 = vld [vmem:[#allocation2 + $0x50] sm:$0xff] }
  0x39   :  { %v584_v13 = vsel %vm572_vm0, %v318_v3, 0.0  ;;  %v574_v14 = vsel %vm572_vm0, %v316_v5, 0.0  ;;  %v319_v16 = vcombine.high %v63_v8, %v63_v8  ;;  %v325_v23 = vcombine.high %v69_v12, %v69_v12  ;;  %v65_v32 = vld [vmem:[#allocation2 + $0x28] sm:$0xff]  ;;  %v71_v33 = vld [vmem:[#allocation2 + $0x58] sm:$0xff]  ;;  %v76_v42 = vld [vmem:[#allocation2 + $0x80] sm:$0xff] }
  0x3a   :  { %v585_v17 = vadd.f32 %v584_v13, %v583_v4  ;;  %v575_v18 = vadd.f32 %v574_v14, %v573_v6  ;;  %v614_v19 = vsel %vm572_vm0, %v324_v9, 0.0  ;;  %v579_v20 = vsel %vm572_vm0, %v317_v11, 0.0  ;;  %v72_v43 = vld [vmem:[#allocation2 + $0x60] sm:$0xff]  ;;  %v66_v52 = vld [vmem:[#allocation2 + $0x30] sm:$0xff]  ;;  %v77_v53 = vld [vmem:[#allocation2 + $0x88] sm:$0xff] }
  0x3b   :  { %v615_v24 = vadd.f32 %v614_v19, %v613_v10  ;;  %v580_v25 = vadd.f32 %v579_v20, %v578_v15  ;;  %v588_v26 = vsel %vm572_vm0, %v63_v8, 0.0  ;;  %v589_v27 = vsel %vm572_vm0, %v319_v16, 0.0  ;;  %v78_v62 = vld [vmem:[#allocation2 + $0x90] sm:$0xff]  ;;  %v73_v63 = vld [vmem:[#allocation2 + $0x68] sm:$0xff]  ;;  %v84_v9 = vld [vmem:[#allocation2 + $0xc0] sm:$0xff] }
  0x3c   :  { %586 = vadd.xlane.f32.xlu1 %v585_v17  ;;  %576 = vadd.xlane.f32.xlu0 %v575_v18  ;;  %v618_v28 = vsel %vm572_vm0, %v69_v12, 0.0  ;;  %v619_v29 = vsel %vm572_vm0, %v325_v23, 0.0  ;;  %v320_v30 = vcombine.high %v64_v21, %v64_v21  ;;  %v326_v31 = vcombine.high %v70_v22, %v70_v22  ;;  %v85_v8 = vld [vmem:[#allocation2 + $0xc8] sm:$0xff]  ;;  %v74_v18 = vld [vmem:[#allocation2 + $0x70] sm:$0xff]  ;;  %v67_v19 = vld [vmem:[#allocation2 + $0x38] sm:$0xff] }
  0x3d   :  { %v590_v34 = vadd.f32 %v589_v27, %v588_v26  ;;  %v620_v35 = vadd.f32 %v619_v29, %v618_v28  ;;  %v593_v36 = vsel %vm572_vm0, %v64_v21, 0.0  ;;  %v321_v37 = vcombine.high %v65_v32, %v65_v32  ;;  %v86_v28 = vld [vmem:[#allocation2 + $0xd0] sm:$0xff]  ;;  %v79_v29 = vld [vmem:[#allocation2 + $0x98] sm:$0xff] }
  0x3e   :  { %v594_v38 = vsel %vm572_vm0, %v320_v30, 0.0  ;;  %v623_v39 = vsel %vm572_vm0, %v70_v22, 0.0  ;;  %v624_v40 = vsel %vm572_vm0, %v326_v31, 0.0  ;;  %v327_v41 = vcombine.high %v71_v33, %v71_v33 }
  0x3f   :  { %v595_v44 = vadd.f32 %v594_v38, %v593_v36  ;;  %v625_v45 = vadd.f32 %v624_v40, %v623_v39  ;;  %v598_v46 = vsel %vm572_vm0, %v65_v32, 0.0  ;;  %v599_v47 = vsel %vm572_vm0, %v321_v37, 0.0  ;;  %v80_v38 = vld [vmem:[#allocation2 + $0xa0] sm:$0xff]  ;;  %v75_v39 = vld [vmem:[#allocation2 + $0x78] sm:$0xff] }
  0x40   :  { %616 = vadd.xlane.f32.xlu1 %v615_v24  ;;  %581 = vadd.xlane.f32.xlu0 %v580_v25  ;;  %v628_v48 = vsel %vm572_vm0, %v71_v33, 0.0  ;;  %v629_v49 = vsel %vm572_vm0, %v327_v41, 0.0  ;;  %v332_v50 = vcombine.high %v76_v42, %v76_v42  ;;  %v328_v51 = vcombine.high %v72_v43, %v72_v43 }
  0x41   :  { %v600_v54 = vadd.f32 %v599_v47, %v598_v46  ;;  %v630_v55 = vadd.f32 %v629_v49, %v628_v48  ;;  %v653_v56 = vsel %vm572_vm0, %v76_v42, 0.0  ;;  %v633_v57 = vsel %vm572_vm0, %v72_v43, 0.0  ;;  %v81_v48 = vld [vmem:[#allocation2 + $0xa8] sm:$0xff]  ;;  %v87_v49 = vld [vmem:[#allocation2 + $0xd8] sm:$0xff] }
  0x42   :  { %v654_v58 = vsel %vm572_vm0, %v332_v50, 0.0  ;;  %v634_v59 = vsel %vm572_vm0, %v328_v51, 0.0  ;;  %v322_v60 = vcombine.high %v66_v52, %v66_v52  ;;  %v333_v61 = vcombine.high %v77_v53, %v77_v53 }
  0x43   :  { %v655_v0 = vadd.f32 %v654_v58, %v653_v56  ;;  %v635_v1 = vadd.f32 %v634_v59, %v633_v57  ;;  %v603_v2 = vsel %vm572_vm0, %v66_v52, 0.0  ;;  %v334_v3 = vcombine.high %v78_v62, %v78_v62  ;;  %v92_v58 = vld [vmem:[#allocation2 + $0x100] sm:$0xff] }
  0x44   :  { %591 = vadd.xlane.f32.xlu1 %v590_v34  ;;  %621 = vadd.xlane.f32.xlu0 %v620_v35  ;;  %v604_v4 = vsel %vm572_vm0, %v322_v60, 0.0  ;;  %v658_v5 = vsel %vm572_vm0, %v77_v53, 0.0  ;;  %v659_v6 = vsel %vm572_vm0, %v333_v61, 0.0  ;;  %v329_v7 = vcombine.high %v73_v63, %v73_v63  ;;  %v88_v59 = vld [vmem:[#allocation2 + $0xe0] sm:$0xff] }
  0x45   :  { %v605_v10 = vadd.f32 %v604_v4, %v603_v2  ;;  %v660_v11 = vadd.f32 %v659_v6, %v658_v5  ;;  %v663_v12 = vsel %vm572_vm0, %v78_v62, 0.0  ;;  %v664_v13 = vsel %vm572_vm0, %v334_v3, 0.0  ;;  %v82_v4 = vld [vmem:[#allocation2 + $0xb0] sm:$0xff]  ;;  %v93_v5 = vld [vmem:[#allocation2 + $0x108] sm:$0xff] }
  0x46   :  { %v638_v14 = vsel %vm572_vm0, %v73_v63, 0.0  ;;  %v639_v15 = vsel %vm572_vm0, %v329_v7, 0.0  ;;  %v341_v16 = vcombine.high %v85_v8, %v85_v8  ;;  %v340_v17 = vcombine.high %v84_v9, %v84_v9 }
  0x47   :  { %v665_v20 = vadd.f32 %v664_v13, %v663_v12  ;;  %v640_v21 = vadd.f32 %v639_v15, %v638_v14  ;;  %v698_v22 = vsel %vm572_vm0, %v85_v8, 0.0  ;;  %v330_v23 = vcombine.high %v74_v18, %v74_v18  ;;  %v94_v14 = vld [vmem:[#allocation2 + $0x110] sm:$0xff]  ;;  %v89_v15 = vld [vmem:[#allocation2 + $0xe8] sm:$0xff] }
  0x48   :  { %596 = vadd.xlane.f32.xlu1 %v595_v44  ;;  %626 = vadd.xlane.f32.xlu0 %v625_v45  ;;  %v699_v24 = vsel %vm572_vm0, %v341_v16, 0.0  ;;  %v693_v25 = vsel %vm572_vm0, %v84_v9, 0.0  ;;  %v694_v26 = vsel %vm572_vm0, %v340_v17, 0.0  ;;  %v323_v27 = vcombine.high %v67_v19, %v67_v19 }
  0x49   :  { %v700_v30 = vadd.f32 %v699_v24, %v698_v22  ;;  %v695_v31 = vadd.f32 %v694_v26, %v693_v25  ;;  %v643_v32 = vsel %vm572_vm0, %v74_v18, 0.0  ;;  %v644_v33 = vsel %vm572_vm0, %v330_v23, 0.0  ;;  %v101_v24 = vld [vmem:[#allocation2 + $0x148] sm:$0xff]  ;;  %v100_v25 = vld [vmem:[#allocation2 + $0x140] sm:$0xff] }
  0x4a   :  { %v608_v34 = vsel %vm572_vm0, %v67_v19, 0.0  ;;  %v609_v35 = vsel %vm572_vm0, %v323_v27, 0.0  ;;  %v342_v36 = vcombine.high %v86_v28, %v86_v28  ;;  %v335_v37 = vcombine.high %v79_v29, %v79_v29 }
  0x4b   :  { %v645_v40 = vadd.f32 %v644_v33, %v643_v32  ;;  %v610_v41 = vadd.f32 %v609_v35, %v608_v34  ;;  %v703_v42 = vsel %vm572_vm0, %v86_v28, 0.0  ;;  %v668_v43 = vsel %vm572_vm0, %v79_v29, 0.0  ;;  %v90_v34 = vld [vmem:[#allocation2 + $0xf0] sm:$0xff]  ;;  %v83_v35 = vld [vmem:[#allocation2 + $0xb8] sm:$0xff] }
  0x4c   :  { %601 = vadd.xlane.f32.xlu1 %v600_v54  ;;  %631 = vadd.xlane.f32.xlu0 %v630_v55  ;;  %v704_v44 = vsel %vm572_vm0, %v342_v36, 0.0  ;;  %v669_v45 = vsel %vm572_vm0, %v335_v37, 0.0  ;;  %v336_v46 = vcombine.high %v80_v38, %v80_v38  ;;  %v331_v47 = vcombine.high %v75_v39, %v75_v39 }
  0x4d   :  { %v705_v50 = vadd.f32 %v704_v44, %v703_v42  ;;  %v670_v51 = vadd.f32 %v669_v45, %v668_v43  ;;  %v673_v52 = vsel %vm572_vm0, %v80_v38, 0.0  ;;  %v337_v53 = vcombine.high %v81_v48, %v81_v48  ;;  %v102_v44 = vld [vmem:[#allocation2 + $0x150] sm:$0xff]  ;;  %v95_v45 = vld [vmem:[#allocation2 + $0x118] sm:$0xff] }
  0x4e   :  { %v674_v54 = vsel %vm572_vm0, %v336_v46, 0.0  ;;  %v648_v55 = vsel %vm572_vm0, %v75_v39, 0.0  ;;  %v649_v56 = vsel %vm572_vm0, %v331_v47, 0.0  ;;  %v343_v57 = vcombine.high %v87_v49, %v87_v49  ;;  %v1213_v46 = vld [vmem:[#allocation5] sm:$0xf] }
  0x4f   :  { %v675_v60 = vadd.f32 %v674_v54, %v673_v52  ;;  %v650_v61 = vadd.f32 %v649_v56, %v648_v55  ;;  %v678_v62 = vsel %vm572_vm0, %v81_v48, 0.0  ;;  %v679_v63 = vsel %vm572_vm0, %v337_v53, 0.0  ;;  %2449 = vmatprep.subr.msk.mxu0 %vm572_vm0, %v1213_v46  ;;  %v96_v55 = vld [vmem:[#allocation2 + $0x120] sm:$0xff]  ;;  %v91_v56 = vld [vmem:[#allocation2 + $0xf8] sm:$0xff] }
  0x50   :  { %656 = vadd.xlane.f32.xlu1 %v655_v0  ;;  %636 = vadd.xlane.f32.xlu0 %v635_v1  ;;  %v708_v0 = vsel %vm572_vm0, %v87_v49, 0.0  ;;  %v709_v1 = vsel %vm572_vm0, %v343_v57, 0.0  ;;  %v348_v2 = vcombine.high %v92_v58, %v92_v58  ;;  %v344_v3 = vcombine.high %v88_v59, %v88_v59 }
  0x51   :  { %v680_v6 = vadd.f32 %v679_v63, %v678_v62  ;;  %v710_v7 = vadd.f32 %v709_v1, %v708_v0  ;;  %v733_v8 = vsel %vm572_vm0, %v92_v58, 0.0  ;;  %v338_v9 = vcombine.high %v82_v4, %v82_v4  ;;  %2450 = vmatpush3.msk.msra.mxu0 %vm572_vm0, %v1213_v46  ;;  %v97_v1 = vld [vmem:[#allocation2 + $0x128] sm:$0xff] }
  0x52   :  { %v714_v12 = vsel %vm572_vm0, %v344_v3, 0.0  ;;  %v349_v13 = vcombine.high %v93_v5, %v93_v5  ;;  %v683_v18 = vsel %vm572_vm0, %v82_v4, 0.0  ;;  %v350_v22 = vcombine.high %v94_v14, %v94_v14 }
  0x53   :  { %v684_v19 = vsel %vm572_vm0, %v338_v9, 0.0  ;;  %v345_v23 = vcombine.high %v89_v15, %v89_v15  ;;  %v743_v28 = vsel %vm572_vm0, %v94_v14, 0.0  ;;  %v718_v29 = vsel %vm572_vm0, %v89_v15, 0.0 }
  0x54   :  { %606 = vadd.xlane.f32.xlu1 %v605_v10  ;;  %661 = vadd.xlane.f32.xlu0 %v660_v11  ;;  %v734_v10 = vsel %vm572_vm0, %v348_v2, 0.0  ;;  %v713_v11 = vsel %vm572_vm0, %v88_v59, 0.0  ;;  %v685_v26 = vadd.f32 %v684_v19, %v683_v18  ;;  %v357_v32 = vcombine.high %v101_v24, %v101_v24  ;;  %v103_v2 = vld [vmem:[#allocation2 + $0x158] sm:$0xff] }
  0x55   :  { %v735_v16 = vadd.f32 %v734_v10, %v733_v8  ;;  %v715_v17 = vadd.f32 %v714_v12, %v713_v11  ;;  %v356_v33 = vcombine.high %v100_v25, %v100_v25  ;;  %v778_v38 = vsel %vm572_vm0, %v101_v24, 0.0  ;;  %v108_v11 = vld [vmem:[#allocation2 + $0x180] sm:$0xff] }
  0x56   :  { %v346_v39 = vcombine.high %v90_v34, %v90_v34  ;;  %v339_v43 = vcombine.high %v83_v35, %v83_v35  ;;  %v723_v49 = vsel %vm572_vm0, %v90_v34, 0.0  ;;  %v358_v53 = vcombine.high %v102_v44, %v102_v44  ;;  %v104_v12 = vld [vmem:[#allocation2 + $0x160] sm:$0xff] }
  0x57   :  { %v774_v42 = vsel %vm572_vm0, %v356_v33, 0.0  ;;  %v351_v54 = vcombine.high %v95_v45, %v95_v45  ;;  %v783_v59 = vsel %vm572_vm0, %v102_v44, 0.0  ;;  %v748_v62 = vsel %vm572_vm0, %v95_v45, 0.0 }
  0x58   :  { %666 = vadd.xlane.f32.xlu1 %v665_v20  ;;  %641 = vadd.xlane.f32.xlu0 %v640_v21  ;;  %v738_v20 = vsel %vm572_vm0, %v93_v5, 0.0  ;;  %v739_v21 = vsel %vm572_vm0, %v349_v13, 0.0  ;;  %v689_v52 = vsel %vm572_vm0, %v339_v43, 0.0  ;;  %v347_v0 = vcombine.high %v91_v56, %v91_v56 }
  0x59   :  { %v740_v27 = vadd.f32 %v739_v21, %v738_v20  ;;  %v749_v63 = vsel %vm572_vm0, %v351_v54, 0.0  ;;  %v753_v5 = vsel %vm572_vm0, %v96_v55, 0.0  ;;  %v353_v9 = vcombine.high %v97_v1, %v97_v1  ;;  %v98_v21 = vld [vmem:[#allocation2 + $0x130] sm:$0xff] }
  0x5a   :  { %v750_v4 = vadd.f32 %v749_v63, %v748_v62  ;;  %v729_v8 = vsel %vm572_vm0, %v347_v0, 0.0  ;;  %v359_v10 = vcombine.high %v103_v2, %v103_v2  ;;  %v758_v15 = vsel %vm572_vm0, %v97_v1, 0.0  ;;  %v111_v62 = vld [vmem:[#allocation2 + $0x198] sm:$0xff] }
  0x5b   :  { %v364_v19 = vcombine.high %v108_v11, %v108_v11  ;;  %v360_v20 = vcombine.high %v104_v12, %v104_v12  ;;  %vm1865_vm2 = vcmask 1042434   ;;  %vm1867_vm3 = vcmask 1043459  }
  0x5c   :  { %701 = vadd.xlane.f32.xlu1 %v700_v30  ;;  %696 = vadd.xlane.f32.xlu0 %v695_v31  ;;  %v744_v30 = vsel %vm572_vm0, %v350_v22, 0.0  ;;  %v719_v31 = vsel %vm572_vm0, %v345_v23, 0.0  ;;  %v789_v18 = vsel %vm572_vm0, %v359_v10, 0.0  ;;  %v109_v22 = vld [vmem:[#allocation2 + $0x188] sm:$0xff]  ;;  %vm1869_vm4 = vcmask 1044484  }
  0x5d   :  { %v745_v36 = vadd.f32 %v744_v30, %v743_v28  ;;  %v720_v37 = vadd.f32 %v719_v31, %v718_v29  ;;  %v793_v28 = vsel %vm572_vm0, %v104_v12, 0.0  ;;  %v794_v29 = vsel %vm572_vm0, %v360_v20, 0.0  ;;  %v110_v31 = vld [vmem:[#allocation2 + $0x190] sm:$0xff] }
  0x5e   :  { %v365_v30 = vcombine.high %v109_v22, %v109_v22  ;;  %v795_v34 = vadd.f32 %v794_v29, %v793_v28  ;;  %v823_v45 = vsel %vm572_vm0, %v110_v31, 0.0  ;;  %v120_v28 = vld [vmem:[#allocation2 + $0x1e0] sm:$0xff]  ;;  %vm1871_vm5 = vcmask 1045509  }
  0x5f   :  { %vm1873_vm6 = vcmask 1046534   ;;  %vm1875_vm7 = vcmask 1047559   ;;  %vm1982_vm8 = vcmask 31744  }
  0x60   :  { %646 = vadd.xlane.f32.xlu1 %v645_v40  ;;  %611 = vadd.xlane.f32.xlu0 %v610_v41  ;;  %v779_v40 = vsel %vm572_vm0, %v357_v32, 0.0  ;;  %v773_v41 = vsel %vm572_vm0, %v100_v25, 0.0  ;;  %v813_v25 = vsel %vm572_vm0, %v108_v11, 0.0  ;;  %v105_v32 = vld [vmem:[#allocation2 + $0x168] sm:$0xff] }
  0x61   :  { %v780_v47 = vadd.f32 %v779_v40, %v778_v38  ;;  %v775_v48 = vadd.f32 %v774_v42, %v773_v41  ;;  %v819_v38 = vsel %vm572_vm0, %v365_v30, 0.0  ;;  %v361_v40 = vcombine.high %v105_v32, %v105_v32  ;;  %v117_v41 = vld [vmem:[#allocation2 + $0x1c8] sm:$0xff]  ;;  %v116_v42 = vld [vmem:[#allocation2 + $0x1c0] sm:$0xff] }
  0x62   :  { %v373_v46 = vcombine.high %v117_v41, %v117_v41 }
  0x64   :  { %706 = vadd.xlane.f32.xlu1 %v705_v50  ;;  %671 = vadd.xlane.f32.xlu0 %v670_v51  ;;  %v724_v50 = vsel %vm572_vm0, %v346_v39, 0.0  ;;  %v688_v51 = vsel %vm572_vm0, %v83_v35, 0.0  ;;  %v763_v35 = vsel %vm572_vm0, %v98_v21, 0.0  ;;  %v366_v39 = vcombine.high %v110_v31, %v110_v31 }
  0x65   :  { %v725_v57 = vadd.f32 %v724_v50, %v723_v49  ;;  %v690_v58 = vadd.f32 %v689_v52, %v688_v51  ;;  %v799_v49 = vsel %vm572_vm0, %v361_v40, 0.0  ;;  %v372_v50 = vcombine.high %v116_v42, %v116_v42  ;;  %v106_v51 = vld [vmem:[#allocation2 + $0x170] sm:$0xff]  ;;  %v99_v52 = vld [vmem:[#allocation2 + $0x138] sm:$0xff] }
  0x66   :  { %v803_v1 = vsel %vm572_vm0, %v106_v51, 0.0 }
  0x68   :  { %676 = vadd.xlane.f32.xlu1 %v675_v60  ;;  %651 = vadd.xlane.f32.xlu0 %v650_v61  ;;  %v352_v60 = vcombine.high %v96_v55, %v96_v55  ;;  %v784_v61 = vsel %vm572_vm0, %v358_v53, 0.0  ;;  %v858_v55 = vsel %vm572_vm0, %v117_v41, 0.0 }
  0x69   :  { %v785_v3 = vadd.f32 %v784_v61, %v783_v59  ;;  %v362_v59 = vcombine.high %v106_v51, %v106_v51  ;;  %v118_v61 = vld [vmem:[#allocation2 + $0x1d0] sm:$0xff] }
  0x6a   :  { %v863_v11 = vsel %vm572_vm0, %v118_v61, 0.0 }
  0x6c   :  { %681 = vadd.xlane.f32.xlu1 %v680_v6  ;;  %711 = vadd.xlane.f32.xlu0 %v710_v7  ;;  %v754_v6 = vsel %vm572_vm0, %v352_v60, 0.0  ;;  %v728_v7 = vsel %vm572_vm0, %v91_v56, 0.0  ;;  %v859_v56 = vsel %vm572_vm0, %v373_v46, 0.0  ;;  %v355_v60 = vcombine.high %v99_v52, %v99_v52 }
  0x6d   :  { %v755_v13 = vadd.f32 %v754_v6, %v753_v5  ;;  %v730_v14 = vadd.f32 %v729_v8, %v728_v7  ;;  %v860_v63 = vadd.f32 %v859_v56, %v858_v55  ;;  %v374_v5 = vcombine.high %v118_v61, %v118_v61  ;;  %v112_v7 = vld [vmem:[#allocation2 + $0x1a0] sm:$0xff]  ;;  %v107_v8 = vld [vmem:[#allocation2 + $0x178] sm:$0xff] }
  0x6e   :  { %v367_v6 = vcombine.high %v111_v62, %v111_v62  ;;  %v368_v12 = vcombine.high %v112_v7, %v112_v7 }
  0x70   :  { %736 = vadd.xlane.f32.xlu1 %v735_v16  ;;  %716 = vadd.xlane.f32.xlu0 %v715_v17  ;;  %v788_v16 = vsel %vm572_vm0, %v103_v2, 0.0  ;;  %v759_v17 = vsel %vm572_vm0, %v353_v9, 0.0  ;;  %v768_v2 = vsel %vm572_vm0, %v99_v52, 0.0 }
  0x71   :  { %v760_v23 = vadd.f32 %v759_v17, %v758_v15  ;;  %v790_v24 = vadd.f32 %v789_v18, %v788_v16  ;;  %v829_v15 = vsel %vm572_vm0, %v367_v6, 0.0  ;;  %v363_v16 = vcombine.high %v107_v8, %v107_v8  ;;  %v113_v17 = vld [vmem:[#allocation2 + $0x1a8] sm:$0xff]  ;;  %v119_v18 = vld [vmem:[#allocation2 + $0x1d8] sm:$0xff] }
  0x72   :  { %v838_v31 = vsel %vm572_vm0, %v113_v17, 0.0 }
  0x74   :  { %686 = vadd.xlane.f32.xlu1 %v685_v26  ;;  %741 = vadd.xlane.f32.xlu0 %v740_v27  ;;  %v354_v26 = vcombine.high %v98_v21, %v98_v21  ;;  %v814_v27 = vsel %vm572_vm0, %v364_v19, 0.0  ;;  %v833_v21 = vsel %vm572_vm0, %v112_v7, 0.0 }
  0x75   :  { %v815_v33 = vadd.f32 %v814_v27, %v813_v25  ;;  %v369_v25 = vcombine.high %v113_v17, %v113_v17  ;;  %v124_v27 = vld [vmem:[#allocation2 + $0x200] sm:$0xff] }
  0x76   :  { %v893_v41 = vsel %vm572_vm0, %v124_v27, 0.0 }
  0x78   :  { %746 = vadd.xlane.f32.xlu1 %v745_v36  ;;  %721 = vadd.xlane.f32.xlu0 %v720_v37  ;;  %v764_v36 = vsel %vm572_vm0, %v354_v26, 0.0  ;;  %v818_v37 = vsel %vm572_vm0, %v109_v22, 0.0  ;;  %v834_v22 = vsel %vm572_vm0, %v368_v12, 0.0  ;;  %v375_v26 = vcombine.high %v119_v18, %v119_v18 }
  0x79   :  { %v765_v43 = vadd.f32 %v764_v36, %v763_v35  ;;  %v820_v44 = vadd.f32 %v819_v38, %v818_v37  ;;  %v835_v29 = vadd.f32 %v834_v22, %v833_v21  ;;  %v376_v36 = vcombine.high %v120_v28, %v120_v28  ;;  %v114_v37 = vld [vmem:[#allocation2 + $0x1b0] sm:$0xff]  ;;  %v125_v38 = vld [vmem:[#allocation2 + $0x208] sm:$0xff] }
  0x7a   :  { %v869_v35 = vsel %vm572_vm0, %v375_v26, 0.0  ;;  %v381_v46 = vcombine.high %v125_v38, %v125_v38  ;;  %v843_v51 = vsel %vm572_vm0, %v114_v37, 0.0  ;;  %v898_v52 = vsel %vm572_vm0, %v125_v38, 0.0 }
  0x7c   :  { %781 = vadd.xlane.f32.xlu1 %v780_v47  ;;  %776 = vadd.xlane.f32.xlu0 %v775_v48  ;;  %v824_v47 = vsel %vm572_vm0, %v366_v39, 0.0  ;;  %v798_v48 = vsel %vm572_vm0, %v105_v32, 0.0  ;;  %v380_v32 = vcombine.high %v124_v27, %v124_v27 }
  0x7d   :  { %v825_v53 = vadd.f32 %v824_v47, %v823_v45  ;;  %v800_v54 = vadd.f32 %v799_v49, %v798_v48  ;;  %v370_v45 = vcombine.high %v114_v37, %v114_v37  ;;  %v126_v47 = vld [vmem:[#allocation2 + $0x210] sm:$0xff]  ;;  %v121_v48 = vld [vmem:[#allocation2 + $0x1e8] sm:$0xff] }
  0x7e   :  { %v382_v55 = vcombine.high %v126_v47, %v126_v47  ;;  %v377_v56 = vcombine.high %v121_v48, %v121_v48  ;;  %v903_v61 = vsel %vm572_vm0, %v126_v47, 0.0 }
  0x80   :  { %726 = vadd.xlane.f32.xlu1 %v725_v57  ;;  %691 = vadd.xlane.f32.xlu0 %v690_v58  ;;  %v853_v57 = vsel %vm572_vm0, %v116_v42, 0.0  ;;  %v854_v58 = vsel %vm572_vm0, %v372_v50, 0.0  ;;  %v894_v42 = vsel %vm572_vm0, %v380_v32, 0.0 }
  0x81   :  { %v855_v0 = vadd.f32 %v854_v58, %v853_v57  ;;  %v895_v49 = vadd.f32 %v894_v42, %v893_v41  ;;  %v133_v57 = vld [vmem:[#allocation2 + $0x248] sm:$0xff]  ;;  %v132_v58 = vld [vmem:[#allocation2 + $0x240] sm:$0xff] }
  0x82   :  { %v938_v7 = vsel %vm572_vm0, %v133_v57, 0.0 }
  0x84   :  { %786 = vadd.xlane.f32.xlu1 %v785_v3  ;;  %751 = vadd.xlane.f32.xlu0 %v750_v4  ;;  %v804_v3 = vsel %vm572_vm0, %v362_v59, 0.0  ;;  %v769_v4 = vsel %vm572_vm0, %v355_v60, 0.0 }
  0x85   :  { %v805_v9 = vadd.f32 %v804_v3, %v803_v1  ;;  %v770_v10 = vadd.f32 %v769_v4, %v768_v2  ;;  %v879_v1 = vsel %vm572_vm0, %v377_v56, 0.0  ;;  %v388_v2 = vcombine.high %v132_v58, %v132_v58  ;;  %v122_v3 = vld [vmem:[#allocation2 + $0x1f0] sm:$0xff]  ;;  %v115_v4 = vld [vmem:[#allocation2 + $0x1b8] sm:$0xff] }
  0x86   :  { %v371_v12 = vcombine.high %v115_v4, %v115_v4  ;;  %v883_v17 = vsel %vm572_vm0, %v122_v3, 0.0 }
  0x88   :  { %756 = vadd.xlane.f32.xlu1 %v755_v13  ;;  %731 = vadd.xlane.f32.xlu0 %v730_v14  ;;  %v864_v13 = vsel %vm572_vm0, %v374_v5, 0.0  ;;  %v828_v14 = vsel %vm572_vm0, %v111_v62, 0.0  ;;  %v389_v62 = vcombine.high %v133_v57, %v133_v57  ;;  %v849_v21 = vsel %vm572_vm0, %v371_v12, 0.0 }
  0x89   :  { %v865_v19 = vadd.f32 %v864_v13, %v863_v11  ;;  %v830_v20 = vadd.f32 %v829_v15, %v828_v14  ;;  %v378_v11 = vcombine.high %v122_v3, %v122_v3  ;;  %v134_v13 = vld [vmem:[#allocation2 + $0x250] sm:$0xff]  ;;  %v127_v14 = vld [vmem:[#allocation2 + $0x218] sm:$0xff] }
  0x8a   :  { %v383_v22 = vcombine.high %v127_v14, %v127_v14  ;;  %v943_v27 = vsel %vm572_vm0, %v134_v13, 0.0 }
  0x8c   :  { %761 = vadd.xlane.f32.xlu1 %v760_v23  ;;  %791 = vadd.xlane.f32.xlu0 %v790_v24  ;;  %v808_v23 = vsel %vm572_vm0, %v107_v8, 0.0  ;;  %v809_v24 = vsel %vm572_vm0, %v363_v16, 0.0  ;;  %v939_v8 = vsel %vm572_vm0, %v389_v62, 0.0 }
  0x8d   :  { %v810_v30 = vadd.f32 %v809_v24, %v808_v23  ;;  %v940_v15 = vadd.f32 %v939_v8, %v938_v7  ;;  %v128_v23 = vld [vmem:[#allocation2 + $0x220] sm:$0xff]  ;;  %v123_v24 = vld [vmem:[#allocation2 + $0x1f8] sm:$0xff] }
  0x8e   :  { %v379_v32 = vcombine.high %v123_v24, %v123_v24  ;;  %v913_v37 = vsel %vm572_vm0, %v128_v23, 0.0  ;;  %v888_v38 = vsel %vm572_vm0, %v123_v24, 0.0 }
  0x90   :  { %816 = vadd.xlane.f32.xlu1 %v815_v33  ;;  %796 = vadd.xlane.f32.xlu0 %v795_v34  ;;  %v839_v33 = vsel %vm572_vm0, %v369_v25, 0.0  ;;  %v868_v34 = vsel %vm572_vm0, %v119_v18, 0.0  ;;  %v390_v18 = vcombine.high %v134_v13, %v134_v13  ;;  %v149_v13 = vld [vmem:[#allocation2 + $0x2c8] sm:$0xff] }
  0x91   :  { %v840_v39 = vadd.f32 %v839_v33, %v838_v31  ;;  %v870_v40 = vadd.f32 %v869_v35, %v868_v34  ;;  %v384_v31 = vcombine.high %v128_v23, %v128_v23  ;;  %v129_v33 = vld [vmem:[#allocation2 + $0x228] sm:$0xff]  ;;  %v135_v34 = vld [vmem:[#allocation2 + $0x258] sm:$0xff] }
  0x92   :  { %v385_v41 = vcombine.high %v129_v33, %v129_v33  ;;  %v391_v42 = vcombine.high %v135_v34, %v135_v34  ;;  %v918_v47 = vsel %vm572_vm0, %v129_v33, 0.0 }
  0x94   :  { %766 = vadd.xlane.f32.xlu1 %v765_v43  ;;  %821 = vadd.xlane.f32.xlu0 %v820_v44  ;;  %v873_v43 = vsel %vm572_vm0, %v120_v28, 0.0  ;;  %v874_v44 = vsel %vm572_vm0, %v376_v36, 0.0  ;;  %v944_v28 = vsel %vm572_vm0, %v390_v18, 0.0  ;;  %v405_v18 = vcombine.high %v149_v13, %v149_v13 }
  0x95   :  { %v875_v50 = vadd.f32 %v874_v44, %v873_v43  ;;  %v945_v35 = vadd.f32 %v944_v28, %v943_v27  ;;  %v140_v43 = vld [vmem:[#allocation2 + $0x280] sm:$0xff]  ;;  %v1018_v27 = vsel %vm572_vm0, %v149_v13, 0.0 }
  0x96   :  { %v136_v44 = vld [vmem:[#allocation2 + $0x260] sm:$0xff]  ;;  %v973_v57 = vsel %vm572_vm0, %v140_v43, 0.0 }
  0x98   :  { %826 = vadd.xlane.f32.xlu1 %v825_v53  ;;  %801 = vadd.xlane.f32.xlu0 %v800_v54  ;;  %v844_v53 = vsel %vm572_vm0, %v370_v45, 0.0  ;;  %v899_v54 = vsel %vm572_vm0, %v381_v46, 0.0 }
  0x99   :  { %v845_v59 = vadd.f32 %v844_v53, %v843_v51  ;;  %v900_v60 = vadd.f32 %v899_v54, %v898_v52  ;;  %v949_v51 = vsel %vm572_vm0, %v391_v42, 0.0  ;;  %v392_v52 = vcombine.high %v136_v44, %v136_v44  ;;  %v130_v53 = vld [vmem:[#allocation2 + $0x230] sm:$0xff]  ;;  %v141_v54 = vld [vmem:[#allocation2 + $0x288] sm:$0xff] }
  0x9b   :  { %v954_v62 = vsel %vm572_vm0, %v392_v52, 0.0 }
  0x9c   :  { %861 = vadd.xlane.f32.xlu1 %v860_v63  ;;  %856 = vadd.xlane.f32.xlu0 %v855_v0  ;;  %v904_v63 = vsel %vm572_vm0, %v382_v55, 0.0  ;;  %v878_v0 = vsel %vm572_vm0, %v121_v48, 0.0  ;;  %v396_v48 = vcombine.high %v140_v43, %v140_v43 }
  0x9d   :  { %v905_v5 = vadd.f32 %v904_v63, %v903_v61  ;;  %v880_v6 = vadd.f32 %v879_v1, %v878_v0  ;;  %v953_v61 = vsel %vm572_vm0, %v136_v44, 0.0  ;;  %v386_v63 = vcombine.high %v130_v53, %v130_v53  ;;  %v142_v1 = vld [vmem:[#allocation2 + $0x290] sm:$0xff] }
  0x9e   :  { %v397_v0 = vcombine.high %v141_v54, %v141_v54 }
  0xa0   :  { %806 = vadd.xlane.f32.xlu1 %v805_v9  ;;  %771 = vadd.xlane.f32.xlu0 %v770_v10  ;;  %v933_v9 = vsel %vm572_vm0, %v132_v58, 0.0  ;;  %v934_v10 = vsel %vm572_vm0, %v388_v2, 0.0  ;;  %v974_v58 = vsel %vm572_vm0, %v396_v48, 0.0  ;;  %v137_v2 = vld [vmem:[#allocation2 + $0x268] sm:$0xff] }
  0xa1   :  { %v935_v16 = vadd.f32 %v934_v10, %v933_v9  ;;  %v975_v3 = vadd.f32 %v974_v58, %v973_v57  ;;  %v924_v9 = vsel %vm572_vm0, %v386_v63, 0.0  ;;  %v979_v10 = vsel %vm572_vm0, %v397_v0, 0.0 }
  0xa2   :  { %v393_v12 = vcombine.high %v137_v2, %v137_v2 }
  0xa4   :  { %866 = vadd.xlane.f32.xlu1 %v865_v19  ;;  %831 = vadd.xlane.f32.xlu0 %v830_v20  ;;  %v884_v19 = vsel %vm572_vm0, %v378_v11, 0.0  ;;  %v848_v20 = vsel %vm572_vm0, %v115_v4, 0.0  ;;  %v955_v4 = vadd.f32 %v954_v62, %v953_v61  ;;  %v398_v11 = vcombine.high %v142_v1, %v142_v1  ;;  %v145_v62 = vld [vmem:[#allocation2 + $0x2a8] sm:$0xff] }
  0xa5   :  { %v885_v25 = vadd.f32 %v884_v19, %v883_v17  ;;  %v850_v26 = vadd.f32 %v849_v21, %v848_v20  ;;  %v983_v17 = vsel %vm572_vm0, %v142_v1, 0.0  ;;  %v959_v23 = vsel %vm572_vm0, %v393_v12, 0.0  ;;  %v151_v1 = vld [vmem:[#allocation2 + $0x2d8] sm:$0xff] }
  0xa6   :  { %v984_v21 = vsel %vm572_vm0, %v398_v11, 0.0  ;;  %v401_v11 = vcombine.high %v145_v62, %v145_v62 }
  0xa7   :  { %v985_v28 = vadd.f32 %v984_v21, %v983_v17  ;;  %v998_v21 = vsel %vm572_vm0, %v145_v62, 0.0 }
  0xa8   :  { %836 = vadd.xlane.f32.xlu1 %v835_v29  ;;  %811 = vadd.xlane.f32.xlu0 %v810_v30  ;;  %v908_v29 = vsel %vm572_vm0, %v127_v14, 0.0  ;;  %v909_v30 = vsel %vm572_vm0, %v383_v22, 0.0  ;;  %v148_v14 = vld [vmem:[#allocation2 + $0x2c0] sm:$0xff]  ;;  %v958_v22 = vsel %vm572_vm0, %v137_v2, 0.0 }
  0xa9   :  { %v910_v36 = vadd.f32 %v909_v30, %v908_v29  ;;  %v404_v24 = vcombine.high %v148_v14, %v148_v14  ;;  %v960_v29 = vadd.f32 %v959_v23, %v958_v22  ;;  %v1019_v30 = vsel %vm572_vm0, %v405_v18, 0.0  ;;  %v156_v2 = vld [vmem:[#allocation2 + $0x300] sm:$0xff] }
  0xaa   :  { %v152_v22 = vld [vmem:[#allocation2 + $0x2e0] sm:$0xff] }
  0xac   :  { %841 = vadd.xlane.f32.xlu1 %v840_v39  ;;  %871 = vadd.xlane.f32.xlu0 %v870_v40  ;;  %v914_v39 = vsel %vm572_vm0, %v384_v31, 0.0  ;;  %v889_v40 = vsel %vm572_vm0, %v379_v32, 0.0  ;;  %v150_v32 = vld [vmem:[#allocation2 + $0x2d0] sm:$0xff] }
  0xad   :  { %v915_v45 = vadd.f32 %v914_v39, %v913_v37  ;;  %v890_v46 = vadd.f32 %v889_v40, %v888_v38  ;;  %v143_v38 = vld [vmem:[#allocation2 + $0x298] sm:$0xff]  ;;  %v1020_v39 = vadd.f32 %v1019_v30, %v1018_v27  ;;  %v406_v40 = vcombine.high %v150_v32, %v150_v32  ;;  %v146_v27 = vld [vmem:[#allocation2 + $0x2b0] sm:$0xff] }
  0xae   :  { %v399_v44 = vcombine.high %v143_v38, %v143_v38  ;;  %v1053_v30 = vsel %vm572_vm0, %v156_v2, 0.0 }
  0xb0   :  { %896 = vadd.xlane.f32.xlu1 %v895_v49  ;;  %876 = vadd.xlane.f32.xlu0 %v875_v50  ;;  %v919_v49 = vsel %vm572_vm0, %v385_v41, 0.0  ;;  %v948_v50 = vsel %vm572_vm0, %v135_v34, 0.0  ;;  %v989_v57 = vsel %vm572_vm0, %v399_v44, 0.0 }
  0xb1   :  { %v920_v55 = vadd.f32 %v919_v49, %v918_v47  ;;  %v950_v56 = vadd.f32 %v949_v51, %v948_v50  ;;  %v144_v49 = vld [vmem:[#allocation2 + $0x2a0] sm:$0xff]  ;;  %v139_v50 = vld [vmem:[#allocation2 + $0x278] sm:$0xff]  ;;  %v1349_v51 = vlaneseq }
  0xb2   :  { %v400_v58 = vcombine.high %v144_v49, %v144_v49  ;;  %v395_v61 = vcombine.high %v139_v50, %v139_v50 }
  0xb4   :  { %846 = vadd.xlane.f32.xlu1 %v845_v59  ;;  %901 = vadd.xlane.f32.xlu0 %v900_v60  ;;  %v994_v12 = vsel %vm572_vm0, %v400_v58, 0.0  ;;  %v969_v13 = vsel %vm572_vm0, %v395_v61, 0.0 }
  0xb8   :  { %906 = vadd.xlane.f32.xlu1 %v905_v5  ;;  %881 = vadd.xlane.f32.xlu0 %v880_v6  ;;  %v923_v5 = vsel %vm572_vm0, %v130_v53, 0.0  ;;  %v978_v6 = vsel %vm572_vm0, %v141_v54, 0.0  ;;  %v1023_v53 = vsel %vm572_vm0, %v150_v32, 0.0  ;;  %v1024_v54 = vsel %vm572_vm0, %v406_v40, 0.0 }
  0xbc   :  { %941 = vadd.xlane.f32.xlu1 %v940_v15  ;;  %936 = vadd.xlane.f32.xlu0 %v935_v16  ;;  %v925_v15 = vadd.f32 %v924_v9, %v923_v5  ;;  %v980_v16 = vadd.f32 %v979_v10, %v978_v6  ;;  %v1025_v5 = vadd.f32 %v1024_v54, %v1023_v53  ;;  %v993_v9 = vsel %vm572_vm0, %v144_v49, 0.0  ;;  %v153_v54 = vld [vmem:[#allocation2 + $0x2e8] sm:$0xff] }
  0xbd   :  { %v968_v10 = vsel %vm572_vm0, %v139_v50, 0.0  ;;  %v995_v23 = vadd.f32 %v994_v12, %v993_v9  ;;  %v409_v62 = vcombine.high %v153_v54, %v153_v54 }
  0xc0   :  { %886 = vadd.xlane.f32.xlu1 %v885_v25  ;;  %851 = vadd.xlane.f32.xlu0 %v850_v26  ;;  %v138_v25 = vld [vmem:[#allocation2 + $0x270] sm:$0xff]  ;;  %v131_v26 = vld [vmem:[#allocation2 + $0x238] sm:$0xff] }
  0xc1   :  { %v394_v31 = vcombine.high %v138_v25, %v138_v25  ;;  %v387_v37 = vcombine.high %v131_v26, %v131_v26  ;;  %v963_v42 = vsel %vm572_vm0, %v138_v25, 0.0  ;;  %v928_v47 = vsel %vm572_vm0, %v131_v26, 0.0 }
  0xc2   :  { %v999_v25 = vsel %vm572_vm0, %v401_v11, 0.0  ;;  %v1028_v26 = vsel %vm572_vm0, %v151_v1, 0.0 }
  0xc3   :  { %v964_v43 = vsel %vm572_vm0, %v394_v31, 0.0  ;;  %v929_v48 = vsel %vm572_vm0, %v387_v37, 0.0  ;;  %v157_v37 = vld [vmem:[#allocation2 + $0x308] sm:$0xff]  ;;  %v1000_v40 = vadd.f32 %v999_v25, %v998_v21  ;;  %v1039_v25 = vsel %vm572_vm0, %v409_v62, 0.0 }
  0xc4   :  { %946 = vadd.xlane.f32.xlu1 %v945_v35  ;;  %911 = vadd.xlane.f32.xlu0 %v910_v36  ;;  %v1013_v35 = vsel %vm572_vm0, %v148_v14, 0.0  ;;  %v1014_v36 = vsel %vm572_vm0, %v404_v24, 0.0  ;;  %v965_v52 = vadd.f32 %v964_v43, %v963_v42  ;;  %v407_v14 = vcombine.high %v151_v1, %v151_v1  ;;  %v165_v1 = vld [vmem:[#allocation2 + $0x348] sm:$0xff] }
  0xc5   :  { %v1015_v41 = vadd.f32 %v1014_v36, %v1013_v35  ;;  %v970_v24 = vadd.f32 %v969_v13, %v968_v10  ;;  %v408_v36 = vcombine.high %v152_v22, %v152_v22  ;;  %v1033_v43 = vsel %vm572_vm0, %v152_v22, 0.0 }
  0xc6   :  { %v1038_v13 = vsel %vm572_vm0, %v153_v54, 0.0  ;;  %v421_v22 = vcombine.high %v165_v1, %v165_v1 }
  0xc8   :  { %916 = vadd.xlane.f32.xlu1 %v915_v45  ;;  %891 = vadd.xlane.f32.xlu0 %v890_v46 }
  0xc9   :  { %v3044_v59 = vpop.xlane.xlu1 %586  ;;  %v3046_v60 = vpop.xlane.xlu0 %576 }
  0xcc   :  { %921 = vadd.xlane.f32.xlu1 %v920_v55  ;;  %951 = vadd.xlane.f32.xlu0 %v950_v56  ;;  %v988_v55 = vsel %vm572_vm0, %v143_v38, 0.0  ;;  %v930_v56 = vadd.f32 %v929_v48, %v928_v47  ;;  %v402_v38 = vcombine.high %v146_v27, %v146_v27  ;;  %v413_v48 = vcombine.high %v157_v37, %v157_v37 }
  0xcd   :  { %v3052_v7 = vpop.xlane.xlu1 %616  ;;  %v3054_v8 = vpop.xlane.xlu0 %581  ;;  %v990_v6 = vadd.f32 %v989_v57, %v988_v55  ;;  %v1003_v55 = vsel %vm572_vm0, %v146_v27, 0.0  ;;  %v1058_v57 = vsel %vm572_vm0, %v157_v37, 0.0 }
  0xd0   :  { %976 = vadd.xlane.f32.xlu1 %v975_v3  ;;  %956 = vadd.xlane.f32.xlu0 %v955_v4  ;;  %v1350_v3 = vand.u32 127, %v1349_v51  ;;  %v1352_v4 = vshrl.u32 %v1349_v51, 7 }
  0xd1   :  { %v3059_v19 = vpop.xlane.xlu1 %591  ;;  %v3061_v20 = vpop.xlane.xlu0 %621 }
  0xd2   :  { %v3098_v18 = vsub.s32 %v1350_v3, %v1352_v4 }
  0xd4   :  { %926 = vadd.xlane.f32.xlu1 %v925_v15  ;;  %981 = vadd.xlane.f32.xlu0 %v980_v16  ;;  %v412_v15 = vcombine.high %v156_v2, %v156_v2  ;;  %v1366_v47 = vrot.slane %v3059_v19, %v3098_v18  ;;  %v1390_v10 = vrot.slane %v3061_v20, %v3098_v18 }
  0xd5   :  { %v3068_v33 = vpop.xlane.xlu1 %596  ;;  %v3070_v34 = vpop.xlane.xlu0 %626 }
  0xd6   :  { %v1054_v31 = vsel %vm572_vm0, %v412_v15, 0.0  ;;  %v1370_v49 = vrot.slane %v3068_v33, %v3098_v18  ;;  %v1394_v15 = vrot.slane %v3070_v34, %v3098_v18 }
  0xd7   :  { %v1055_v42 = vadd.f32 %v1054_v31, %v1053_v30  ;;  %v147_v30 = vld [vmem:[#allocation2 + $0x2b8] sm:$0xff] }
  0xd8   :  { %986 = vadd.xlane.f32.xlu1 %v985_v28  ;;  %961 = vadd.xlane.f32.xlu0 %v960_v29  ;;  %v1358_v28 = vrot.slane %v3054_v8, %v3098_v18  ;;  %v1029_v29 = vsel %vm572_vm0, %v407_v14, 0.0  ;;  %v1354_v8 = vrot.slane %v3046_v60, %v3098_v18  ;;  %v1362_v60 = vrot.slane %v3044_v59, %v3098_v18  ;;  %v164_v14 = vld [vmem:[#allocation2 + $0x340] sm:$0xff] }
  0xd9   :  { %v3076_v45 = vpop.xlane.xlu1 %601  ;;  %v3078_v46 = vpop.xlane.xlu0 %631 }
  0xda   :  { %v1864_v44 = vsel %vm1863_vm1, %v1358_v28, %v1354_v8  ;;  %v1374_v19 = vrot.slane %v3076_v45, %v3098_v18  ;;  %v1059_v45 = vsel %vm572_vm0, %v413_v48, 0.0  ;;  %v1398_v20 = vrot.slane %v3078_v46, %v3098_v18  ;;  %v166_v48 = vld [vmem:[#allocation2 + $0x350] sm:$0xff] }
  0xdb   :  { %v1866_v59 = vsel %vm1865_vm2, %v1362_v60, %v1864_v44  ;;  %v1060_v21 = vadd.f32 %v1059_v45, %v1058_v57  ;;  %v420_v28 = vcombine.high %v164_v14, %v164_v14 }
  0xdc   :  { %1021 = vadd.xlane.f32.xlu1 %v1020_v39  ;;  %1016 = vadd.xlane.f32.xlu0 %v1015_v41  ;;  %v158_v39 = vld [vmem:[#allocation2 + $0x310] sm:$0xff]  ;;  %v1030_v41 = vadd.f32 %v1029_v29, %v1028_v26  ;;  %v1868_v58 = vsel %vm1867_vm3, %v1366_v47, %v1866_v59  ;;  %v403_v47 = vcombine.high %v147_v30, %v147_v30 }
  0xdd   :  { %v3086_v63 = vpop.xlane.xlu1 %656  ;;  %v3088_v0 = vpop.xlane.xlu0 %636  ;;  %v414_v53 = vcombine.high %v158_v39, %v158_v39  ;;  %v1870_v2 = vsel %vm1869_vm4, %v1370_v49, %v1868_v58  ;;  %v154_v29 = vld [vmem:[#allocation2 + $0x2f0] sm:$0xff]  ;;  %v422_v59 = vcombine.high %v166_v48, %v166_v48 }
  0xde   :  { %v1872_v12 = vsel %vm1871_vm5, %v1374_v19, %v1870_v2  ;;  %v1402_v26 = vrot.slane %v3088_v0, %v3098_v18  ;;  %v1040_v0 = vadd.f32 %v1039_v25, %v1038_v13  ;;  %v410_v44 = vcombine.high %v154_v29, %v154_v29  ;;  %v155_v2 = vld [vmem:[#allocation2 + $0x2f8] sm:$0xff] }
  0xdf   :  { %v1064_v9 = vsel %vm572_vm0, %v414_v53, 0.0  ;;  %v1009_v45 = vsel %vm572_vm0, %v403_v47, 0.0 }
  0xe0   :  { %966 = vadd.xlane.f32.xlu1 %v965_v52  ;;  %931 = vadd.xlane.f32.xlu0 %v930_v56  ;;  %v1034_v52 = vsel %vm572_vm0, %v408_v36, 0.0  ;;  %v1004_v56 = vsel %vm572_vm0, %v402_v38, 0.0  ;;  %v1098_v38 = vsel %vm572_vm0, %v165_v1, 0.0  ;;  %v1044_v58 = vsel %vm572_vm0, %v410_v44, 0.0  ;;  %v160_v1 = vld [vmem:[#allocation2 + $0x320] sm:$0xff]  ;;  %v173_v44 = vld [vmem:[#allocation2 + $0x388] sm:$0xff] }
  0xe1   :  { %v3094_v16 = vpop.xlane.xlu1 %606  ;;  %v3096_v17 = vpop.xlane.xlu0 %661  ;;  %v1035_v61 = vadd.f32 %v1034_v52, %v1033_v43  ;;  %v1094_v43 = vsel %vm572_vm0, %v420_v28, 0.0  ;;  %v159_v52 = vld [vmem:[#allocation2 + $0x318] sm:$0xff]  ;;  %v1073_v28 = vsel %vm572_vm0, %v160_v1, 0.0 }
  0xe2   :  { %v1378_v33 = vrot.slane %v3094_v16, %v3098_v18  ;;  %v415_v62 = vcombine.high %v159_v52, %v159_v52  ;;  %v1068_v13 = vsel %vm572_vm0, %v159_v52, 0.0  ;;  %v1422_v47 = vrot.slane %v3096_v17, %v3098_v18  ;;  %v174_v17 = vld [vmem:[#allocation2 + $0x390] sm:$0xff] }
  0xe4   :  { %1026 = vadd.xlane.f32.xlu1 %v1025_v5  ;;  %991 = vadd.xlane.f32.xlu0 %v990_v6  ;;  %v1005_v5 = vadd.f32 %v1004_v56, %v1003_v55  ;;  %v1063_v6 = vsel %vm572_vm0, %v158_v39, 0.0  ;;  %v1874_v16 = vsel %vm1873_vm6, %v1378_v33, %v1872_v12  ;;  %v1099_v39 = vsel %vm572_vm0, %v421_v22, 0.0 }
  0xe5   :  { %v3108_v32 = vpop.xlane.xlu1 %666  ;;  %v3110_v35 = vpop.xlane.xlu0 %641  ;;  %v1065_v37 = vadd.f32 %v1064_v9, %v1063_v6  ;;  %v1100_v54 = vadd.f32 %v1099_v39, %v1098_v38  ;;  %v1043_v56 = vsel %vm572_vm0, %v154_v29, 0.0  ;;  %v1104_v6 = vsel %vm572_vm0, %v422_v59, 0.0  ;;  %v161_v9 = vld [vmem:[#allocation2 + $0x328] sm:$0xff] }
  0xe6   :  { %v1406_v46 = vrot.slane %v3110_v35, %v3098_v18 }
  0xe8   :  { %996 = vadd.xlane.f32.xlu1 %v995_v23  ;;  %971 = vadd.xlane.f32.xlu0 %v970_v24  ;;  %v1386_v23 = vrot.slane %v3052_v7, %v3098_v18 }
  0xe9   :  { %v3122_v50 = vpop.xlane.xlu1 %701  ;;  %v3124_v51 = vpop.xlane.xlu0 %696 }
  0xea   :  { %v1877_v7 = vsel %vm1863_vm1, %v1390_v10, %v1386_v23  ;;  %v167_v10 = vld [vmem:[#allocation2 + $0x358] sm:$0xff] }
  0xeb   :  { %v1878_v31 = vsel %vm1865_vm2, %v1394_v15, %v1877_v7  ;;  %v416_v15 = vcombine.high %v160_v1, %v160_v1  ;;  %v423_v22 = vcombine.high %v167_v10, %v167_v10 }
  0xec   :  { %1001 = vadd.xlane.f32.xlu1 %v1000_v40  ;;  %1031 = vadd.xlane.f32.xlu0 %v1030_v41  ;;  %v1879_v8 = vsel %vm1867_vm3, %v1398_v20, %v1878_v31  ;;  %v1093_v40 = vsel %vm572_vm0, %v164_v14, 0.0  ;;  %v1069_v14 = vsel %vm572_vm0, %v415_v62, 0.0  ;;  %v168_v31 = vld [vmem:[#allocation2 + $0x360] sm:$0xff] }
  0xed   :  { %v647_v3 = vpop.xlane.xlu1 %646  ;;  %v612_v4 = vpop.xlane.xlu0 %611  ;;  %v1880_v35 = vsel %vm1869_vm4, %v1402_v26, %v1879_v8  ;;  %v1095_v55 = vadd.f32 %v1094_v43, %v1093_v40  ;;  %v1070_v20 = vadd.f32 %v1069_v14, %v1068_v13  ;;  %v1074_v7 = vsel %vm572_vm0, %v416_v15, 0.0  ;;  %v162_v40 = vld [vmem:[#allocation2 + $0x330] sm:$0xff] }
  0xee   :  { %v1382_v11 = vrot.slane %v612_v4, %v3098_v18  ;;  %v1410_v36 = vrot.slane %v647_v3, %v3098_v18  ;;  %v1881_v60 = vsel %vm1871_vm5, %v1406_v46, %v1880_v35  ;;  %v1045_v3 = vadd.f32 %v1044_v58, %v1043_v56 }
  0xef   :  { %v1048_v46 = vsel %vm572_vm0, %v155_v2, 0.0  ;;  %v1075_v38 = vadd.f32 %v1074_v7, %v1073_v28  ;;  %v424_v43 = vcombine.high %v168_v31, %v168_v31  ;;  %v429_v56 = vcombine.high %v173_v44, %v173_v44  ;;  %v180_v28 = vld [vmem:[#allocation2 + $0x3c0] sm:$0xff] }
  0xf0   :  { %1056 = vadd.xlane.f32.xlu1 %v1055_v42  ;;  %1036 = vadd.xlane.f32.xlu0 %v1035_v61  ;;  %v1876_v24 = vsel %vm1875_vm7, %v1382_v11, %v1874_v16  ;;  %v1882_v53 = vsel %vm1873_vm6, %v1410_v36, %v1881_v60  ;;  %v1008_v61 = vsel %vm572_vm0, %v147_v30, 0.0  ;;  %v411_v16 = vcombine.high %v155_v2, %v155_v2  ;;  %v169_v2 = vld [vmem:[#allocation2 + $0x368] sm:$0xff] }
  0xf1   :  { %v3156_v34 = vpop.xlane.xlu1 %706  ;;  %2451 = vmatprep.mubr.msk.f32.mxu0 %vm1982_vm8, %v1876_v24  ;;  %v3159_v27 = vpop.xlane.xlu0 %671  ;;  %v1010_v4 = vadd.f32 %v1009_v45, %v1008_v61  ;;  %v172_v24 = vld [vmem:[#allocation2 + $0x380] sm:$0xff]  ;;  %v1078_v30 = vsel %vm572_vm0, %v161_v9, 0.0  ;;  %v1113_v61 = vsel %vm572_vm0, %v168_v31, 0.0  ;;  %v1114_v45 = vsel %vm572_vm0, %v424_v43, 0.0 }
  0xf2   :  { %v1049_v29 = vsel %vm572_vm0, %v411_v16, 0.0  ;;  %v428_v8 = vcombine.high %v172_v24, %v172_v24  ;;  %v1133_v52 = vsel %vm572_vm0, %v172_v24, 0.0  ;;  %v1083_v1 = vsel %vm572_vm0, %v162_v40, 0.0 }
  0xf3   :  { %v1050_v39 = vadd.f32 %v1049_v29, %v1048_v46  ;;  %v1143_v16 = vsel %vm572_vm0, %v174_v17, 0.0  ;;  %v1458_v7 = vrot.slane %v3156_v34, %v3098_v18 }
  0xf4   :  { %1006 = vadd.xlane.f32.xlu1 %v1005_v5  ;;  %1061 = vadd.xlane.f32.xlu0 %v1060_v21  ;;  %v1103_v5 = vsel %vm572_vm0, %v166_v48, 0.0  ;;  %v417_v21 = vcombine.high %v161_v9, %v161_v9  ;;  %v1115_v9 = vadd.f32 %v1114_v45, %v1113_v61 }
  0xf5   :  { %v3171_v41 = vpop.xlane.xlu1 %676  ;;  %v652_v42 = vpop.xlane.xlu0 %651  ;;  %v1105_v23 = vadd.f32 %v1104_v6, %v1103_v5  ;;  %v430_v5 = vcombine.high %v174_v17, %v174_v17 }
  0xf6   :  { %v1414_v49 = vrot.slane %v652_v42, %v3098_v18  ;;  %v1079_v36 = vsel %vm572_vm0, %v417_v21, 0.0  ;;  %v1434_v59 = vrot.slane %v3171_v41, %v3098_v18  ;;  %v425_v21 = vcombine.high %v169_v2, %v169_v2 }
  0xf7   :  { %v1080_v48 = vadd.f32 %v1079_v36, %v1078_v30  ;;  %v1118_v36 = vsel %vm572_vm0, %v169_v2, 0.0 }
  0xf8   :  { %1066 = vadd.xlane.f32.xlu1 %v1065_v37  ;;  %1041 = vadd.xlane.f32.xlu0 %v1040_v0  ;;  %v1883_v19 = vsel %vm1875_vm7, %v1414_v49, %v1882_v53  ;;  %v1108_v37 = vsel %vm572_vm0, %v167_v10, 0.0  ;;  %v1109_v0 = vsel %vm572_vm0, %v423_v22, 0.0  ;;  %v1426_v49 = vrot.slane %v3108_v32, %v3098_v18 }
  0xf9   :  { %v3179_v33 = vpop.xlane.xlu1 %681  ;;  %2452 = vmatmul.mubr.msk.f32.vlgmr.msra.gmra.mrb[0].mxu0 %vm1982_vm8, %v1883_v19  ;;  %v3182_v57 = vpop.xlane.xlu0 %711  ;;  %v1110_v60 = vadd.f32 %v1109_v0, %v1108_v37  ;;  %v1134_v53 = vsel %vm572_vm0, %v428_v8, 0.0  ;;  %v1418_v19 = vrot.slane %v3086_v63, %v3098_v18  ;;  %v1454_v22 = vrot.slane %v3122_v50, %v3098_v18 }
  0xfa   :  { %v1135_v62 = vadd.f32 %v1134_v53, %v1133_v52  ;;  %v1462_v31 = vrot.slane %v3182_v57, %v3098_v18  ;;  %v1119_v8 = vsel %vm572_vm0, %v425_v21, 0.0  ;;  %v1173_v53 = vsel %vm572_vm0, %v180_v28, 0.0 }
  0xfb   :  { %v1884_v63 = vsel %vm1863_vm1, %v1422_v47, %v1418_v19  ;;  %v1120_v52 = vadd.f32 %v1119_v8, %v1118_v36 }
  0xfc   :  { %1101 = vadd.xlane.f32.xlu1 %v1100_v54  ;;  %1096 = vadd.xlane.f32.xlu0 %v1095_v55  ;;  %v418_v54 = vcombine.high %v162_v40, %v162_v40  ;;  %v1430_v55 = vrot.slane %v3159_v27, %v3098_v18  ;;  %v1438_v27 = vrot.slane %v3179_v33, %v3098_v18  ;;  %v1139_v33 = vsel %vm572_vm0, %v429_v56, 0.0 }
  0xfd   :  { %v3189_v11 = vpop.xlane.xlu1 %736  ;;  %v3191_v12 = vpop.xlane.xlu0 %716 }
  0xfe   :  { %v1084_v10 = vsel %vm572_vm0, %v418_v54, 0.0  ;;  %v1466_v37 = vrot.slane %v3191_v12, %v3098_v18 }
  0xff   :  { %v1085_v29 = vadd.f32 %v1084_v10, %v1083_v1 }
 0x100   :  { %1046 = vadd.xlane.f32.xlu1 %v1045_v3  ;;  %1011 = vadd.xlane.f32.xlu0 %v1010_v4  ;;  %v1885_v3 = vsel %vm1865_vm2, %v1426_v49, %v1884_v63  ;;  %v1138_v4 = vsel %vm572_vm0, %v173_v44, 0.0  ;;  %v163_v44 = vld [vmem:[#allocation2 + $0x338] sm:$0xff]  ;;  %v182_v63 = vld [vmem:[#allocation2 + $0x3d0] sm:$0xff] }
 0x101   :  { %v3195_v25 = vpop.xlane.xlu1 %686  ;;  %v3197_v26 = vpop.xlane.xlu0 %741  ;;  %v1886_v6 = vsel %vm1867_vm3, %v1430_v55, %v1885_v3  ;;  %v1140_v30 = vadd.f32 %v1139_v33, %v1138_v4  ;;  %v438_v33 = vcombine.high %v182_v63, %v182_v63 }
 0x102   :  { %v1442_v41 = vrot.slane %v3195_v25, %v3098_v18  ;;  %v1887_v13 = vsel %vm1869_vm4, %v1434_v59, %v1886_v6  ;;  %v181_v25 = vld [vmem:[#allocation2 + $0x3c8] sm:$0xff]  ;;  %v419_v59 = vcombine.high %v163_v44, %v163_v44 }
 0x103   :  { %v437_v57 = vcombine.high %v181_v25, %v181_v25 }
 0x104   :  { %1106 = vadd.xlane.f32.xlu1 %v1105_v23  ;;  %1071 = vadd.xlane.f32.xlu0 %v1070_v20  ;;  %v1450_v23 = vrot.slane %v3124_v51, %v3098_v18  ;;  %v1888_v20 = vsel %vm1871_vm5, %v1438_v27, %v1887_v13  ;;  %v1144_v51 = vsel %vm572_vm0, %v430_v5, 0.0  ;;  %v175_v27 = vld [vmem:[#allocation2 + $0x398] sm:$0xff]  ;;  %v1089_v10 = vsel %vm572_vm0, %v419_v59, 0.0 }
 0x105   :  { %v3207_v35 = vpop.xlane.xlu1 %746  ;;  %v3209_v42 = vpop.xlane.xlu0 %721  ;;  %v1889_v46 = vsel %vm1873_vm6, %v1442_v41, %v1888_v20  ;;  %v1179_v56 = vsel %vm572_vm0, %v437_v57, 0.0  ;;  %v431_v13 = vcombine.high %v175_v27, %v175_v27  ;;  %v177_v20 = vld [vmem:[#allocation2 + $0x3a8] sm:$0xff]  ;;  %v1486_v59 = vrot.slane %v3197_v26, %v3098_v18 }
 0x106   :  { %v1891_v40 = vsel %vm1863_vm1, %v1454_v22, %v1450_v23  ;;  %v1470_v43 = vrot.slane %v3209_v42, %v3098_v18  ;;  %v1183_v22 = vsel %vm572_vm0, %v182_v63, 0.0 }
 0x107   :  { %v1892_v47 = vsel %vm1865_vm2, %v1458_v7, %v1891_v40  ;;  %v1148_v7 = vsel %vm572_vm0, %v175_v27, 0.0 }
 0x108   :  { %1076 = vadd.xlane.f32.xlu1 %v1075_v38  ;;  %1051 = vadd.xlane.f32.xlu0 %v1050_v39  ;;  %v436_v38 = vcombine.high %v180_v28, %v180_v28  ;;  %v170_v39 = vld [vmem:[#allocation2 + $0x370] sm:$0xff]  ;;  %v1893_v49 = vsel %vm1867_vm3, %v1462_v31, %v1892_v47  ;;  %v1184_v28 = vsel %vm572_vm0, %v438_v33, 0.0 }
 0x109   :  { %v3223_v58 = vpop.xlane.xlu1 %781  ;;  %v3225_v32 = vpop.xlane.xlu0 %776  ;;  %v426_v54 = vcombine.high %v170_v39, %v170_v39  ;;  %v1894_v19 = vsel %vm1869_vm4, %v1466_v37, %v1893_v49  ;;  %v1123_v1 = vsel %vm572_vm0, %v170_v39, 0.0 }
 0x10a   :  { %v1174_v17 = vsel %vm572_vm0, %v436_v38, 0.0  ;;  %v1895_v61 = vsel %vm1871_vm5, %v1470_v43, %v1894_v19  ;;  %v178_v43 = vld [vmem:[#allocation2 + $0x3b0] sm:$0xff] }
 0x10b   :  { %v1175_v41 = vadd.f32 %v1174_v17, %v1173_v53  ;;  %v1124_v4 = vsel %vm572_vm0, %v426_v54, 0.0  ;;  %v434_v53 = vcombine.high %v178_v43, %v178_v43  ;;  %v179_v54 = vld [vmem:[#allocation2 + $0x3b8] sm:$0xff]  ;;  %v185_v17 = vld [vmem:[#allocation2 + $0x3e8] sm:$0xff]  ;;  %v1163_v27 = vsel %vm572_vm0, %v178_v43, 0.0 }
 0x10c   :  { %1081 = vadd.xlane.f32.xlu1 %v1080_v48  ;;  %1111 = vadd.xlane.f32.xlu0 %v1110_v60  ;;  %v1145_v48 = vadd.f32 %v1144_v51, %v1143_v16  ;;  %v1178_v60 = vsel %vm572_vm0, %v181_v25, 0.0  ;;  %v1125_v16 = vadd.f32 %v1124_v4, %v1123_v1  ;;  %v1185_v51 = vadd.f32 %v1184_v28, %v1183_v22 }
 0x10d   :  { %v727_v14 = vpop.xlane.xlu1 %726  ;;  %v692_v15 = vpop.xlane.xlu0 %691  ;;  %v1180_v3 = vadd.f32 %v1179_v56, %v1178_v60  ;;  %v1482_v1 = vrot.slane %v3189_v11, %v3098_v18  ;;  %v1168_v33 = vsel %vm572_vm0, %v179_v54, 0.0 }
 0x10e   :  { %v1446_v24 = vrot.slane %v692_v15, %v3098_v18  ;;  %v1474_v12 = vrot.slane %v727_v14, %v3098_v18  ;;  %v176_v14 = vld [vmem:[#allocation2 + $0x3a0] sm:$0xff]  ;;  %v171_v15 = vld [vmem:[#allocation2 + $0x378] sm:$0xff] }
 0x10f   :  { %v432_v23 = vcombine.high %v176_v14, %v176_v14  ;;  %v1153_v31 = vsel %vm572_vm0, %v176_v14, 0.0  ;;  %v1128_v39 = vsel %vm572_vm0, %v171_v15, 0.0  ;;  %v1898_v11 = vsel %vm1863_vm1, %v1486_v59, %v1482_v1  ;;  %v187_v14 = vld [vmem:[#allocation2 + $0x3f8] sm:$0xff] }
 0x110   :  { %1136 = vadd.xlane.f32.xlu1 %v1135_v62  ;;  %1116 = vadd.xlane.f32.xlu0 %v1115_v9  ;;  %v1890_v50 = vsel %vm1875_vm7, %v1446_v24, %v1889_v46  ;;  %v1896_v62 = vsel %vm1873_vm6, %v1474_v12, %v1895_v61  ;;  %v1088_v9 = vsel %vm572_vm0, %v163_v44, 0.0  ;;  %v1149_v46 = vsel %vm572_vm0, %v431_v13, 0.0  ;;  %v184_v44 = vld [vmem:[#allocation2 + $0x3e0] sm:$0xff]  ;;  %v186_v13 = vld [vmem:[#allocation2 + $0x3f0] sm:$0xff] }
 0x111   :  { %v3258_v0 = vpop.xlane.xlu1 %786  ;;  %2454 = vmatprep.mubr.msk.f32.mxu0 %vm1982_vm8, %v1890_v50  ;;  %v3261_v34 = vpop.xlane.xlu0 %751  ;;  %v1090_v21 = vadd.f32 %v1089_v10, %v1088_v9  ;;  %v433_v50 = vcombine.high %v177_v20, %v177_v20  ;;  %v1150_v36 = vadd.f32 %v1149_v46, %v1148_v7  ;;  %v1154_v37 = vsel %vm572_vm0, %v432_v23, 0.0 }
 0x112   :  { %v1155_v47 = vadd.f32 %v1154_v37, %v1153_v31  ;;  %v1158_v12 = vsel %vm572_vm0, %v177_v20, 0.0  ;;  %v440_v56 = vcombine.high %v184_v44, %v184_v44  ;;  %v1193_v9 = vsel %vm572_vm0, %v184_v44, 0.0  ;;  %v2179_v44 = vld [vmem:[#allocation7] sm:$0xff] }
 0x113   :  { %v1198_v20 = vsel %vm572_vm0, %v185_v17, 0.0  ;;  %v1518_v31 = vrot.slane %v3223_v58, %v3098_v18  ;;  %v1522_v37 = vrot.slane %v3258_v0, %v3098_v18  ;;  %v1208_v43 = vsel %vm572_vm0, %v187_v14, 0.0 }
 0x114   :  { %1086 = vadd.xlane.f32.xlu1 %v1085_v29  ;;  %1141 = vadd.xlane.f32.xlu0 %v1140_v30  ;;  %v427_v29 = vcombine.high %v171_v15, %v171_v15  ;;  %v183_v30 = vld [vmem:[#allocation2 + $0x3d8] sm:$0xff]  ;;  %v1194_v10 = vsel %vm572_vm0, %v440_v56, 0.0 }
 0x115   :  { %v3273_v55 = vpop.xlane.xlu1 %756  ;;  %v732_v42 = vpop.xlane.xlu0 %731  ;;  %v439_v8 = vcombine.high %v183_v30, %v183_v30  ;;  %v1188_v49 = vsel %vm572_vm0, %v183_v30, 0.0  ;;  %v1195_v23 = vadd.f32 %v1194_v10, %v1193_v9  ;;  %v443_v30 = vcombine.high %v187_v14, %v187_v14  ;;  %v2184_v9 = vld [vmem:[#allocation7 + $0x28] sm:$0xff] }
 0x116   :  { %v1478_v45 = vrot.slane %v732_v42, %v3098_v18  ;;  %v1129_v40 = vsel %vm572_vm0, %v427_v29, 0.0  ;;  %v1498_v26 = vrot.slane %v3273_v55, %v3098_v18  ;;  %v442_v29 = vcombine.high %v186_v13, %v186_v13 }
 0x117   :  { %v1130_v60 = vadd.f32 %v1129_v40, %v1128_v39 }
 0x118   :  { %1146 = vadd.xlane.f32.xlu1 %v1145_v48  ;;  %1121 = vadd.xlane.f32.xlu0 %v1120_v52  ;;  %v1897_v2 = vsel %vm1875_vm7, %v1478_v45, %v1896_v62  ;;  %v1159_v48 = vsel %vm572_vm0, %v433_v50, 0.0  ;;  %v1189_v52 = vsel %vm572_vm0, %v439_v8, 0.0  ;;  %v1490_v45 = vrot.slane %v3207_v35, %v3098_v18 }
 0x119   :  { %v3283_v5 = vpop.xlane.xlu1 %761  ;;  %2455 = vmatmul.mubr.msk.f32.gmra.mrb[2].mxu0 %vm1982_vm8, %v1897_v2  ;;  %v3286_v6 = vpop.xlane.xlu0 %791  ;;  %v1160_v61 = vadd.f32 %v1159_v48, %v1158_v12  ;;  %v1190_v63 = vadd.f32 %v1189_v52, %v1188_v49  ;;  %v435_v62 = vcombine.high %v179_v54, %v179_v54  ;;  %v1494_v2 = vrot.slane %v3261_v34, %v3098_v18 }
 0x11a   :  { %v1502_v34 = vrot.slane %v3283_v5, %v3098_v18  ;;  %v1899_v15 = vsel %vm1865_vm2, %v1490_v45, %v1898_v11  ;;  %v1514_v50 = vrot.slane %v3225_v32, %v3098_v18  ;;  %v1526_v40 = vrot.slane %v3286_v6, %v3098_v18  ;;  %v2182_v45 = vld [vmem:[#allocation7 + $0x18] sm:$0xff] }
 0x11b   :  { %v1900_v22 = vsel %vm1867_vm3, %v1494_v2, %v1899_v15  ;;  %v1203_v32 = vsel %vm572_vm0, %v186_v13, 0.0  ;;  %v1204_v6 = vsel %vm572_vm0, %v442_v29, 0.0  ;;  %v2186_v13 = vld [vmem:[#allocation7 + $0x38] sm:$0xff] }
 0x11c   :  { %1181 = vadd.xlane.f32.xlu1 %v1180_v3  ;;  %1176 = vadd.xlane.f32.xlu0 %v1175_v41  ;;  %v1164_v3 = vsel %vm572_vm0, %v434_v53, 0.0  ;;  %v441_v41 = vcombine.high %v185_v17, %v185_v17  ;;  %v1901_v28 = vsel %vm1869_vm4, %v1498_v26, %v1900_v22  ;;  %v1905_v52 = vsel %vm1863_vm1, %v1518_v31, %v1514_v50  ;;  %v2183_v26 = vld [vmem:[#allocation7 + $0x20] sm:$0xff] }
 0x11d   :  { %v3291_v24 = vpop.xlane.xlu1 %816  ;;  %v3293_v25 = vpop.xlane.xlu0 %796  ;;  %v1906_v54 = vsel %vm1865_vm2, %v1522_v37, %v1905_v52  ;;  %v1205_v17 = vadd.f32 %v1204_v6, %v1203_v32  ;;  %v2192_v37 = vld [vmem:[#allocation7 + $0x68] sm:$0xff] }
 0x11e   :  { %v1199_v5 = vsel %vm572_vm0, %v441_v41, 0.0  ;;  %v1530_v0 = vrot.slane %v3293_v25, %v3098_v18  ;;  %v1907_v56 = vsel %vm1867_vm3, %v1526_v40, %v1906_v54  ;;  %v1546_v50 = vrot.slane %v3291_v24, %v3098_v18 }
 0x11f   :  { %v1200_v39 = vadd.f32 %v1199_v5, %v1198_v20  ;;  %v2189_v5 = vld [vmem:[#allocation7 + $0x50] sm:$0xff] }
 0x120   :  { %1126 = vadd.xlane.f32.xlu1 %v1125_v16  ;;  %1091 = vadd.xlane.f32.xlu0 %v1090_v21  ;;  %v1165_v16 = vadd.f32 %v1164_v3, %v1163_v27  ;;  %v1169_v21 = vsel %vm572_vm0, %v435_v62, 0.0 }
 0x121   :  { %v3300_v57 = vpop.xlane.xlu1 %766  ;;  %v3302_v38 = vpop.xlane.xlu0 %821 }
 0x122   :  { %v1506_v55 = vrot.slane %v3300_v57, %v3098_v18  ;;  %v1170_v57 = vadd.f32 %v1169_v21, %v1168_v33  ;;  %v2185_v33 = vld [vmem:[#allocation7 + $0x30] sm:$0xff]  ;;  %v2188_v21 = vld [vmem:[#allocation7 + $0x48] sm:$0xff] }
 0x124   :  { %1186 = vadd.xlane.f32.xlu1 %v1185_v51  ;;  %1151 = vadd.xlane.f32.xlu0 %v1150_v36  ;;  %v1902_v51 = vsel %vm1871_vm5, %v1502_v34, %v1901_v28  ;;  %v2539_v34 = vpack.c.bf16 %v2184_v9, %v2183_v26  ;;  %v2190_v28 = vld [vmem:[#allocation7 + $0x58] sm:$0xff] }
 0x125   :  { %v3310_v19 = vpop.xlane.xlu1 %826  ;;  %v3312_v42 = vpop.xlane.xlu0 %801  ;;  %v1903_v8 = vsel %vm1873_vm6, %v1506_v55, %v1902_v51  ;;  %v2543_v55 = vpack.c.bf16 %v2186_v13, %v2185_v33  ;;  %v2551_v29 = vpack.c.bf16 %v2190_v28, %v2189_v5 }
 0x126   :  { %v1534_v53 = vrot.slane %v3312_v42, %v3098_v18  ;;  %v1554_v31 = vrot.slane %v3310_v19, %v3098_v18 }
 0x128   :  { %1156 = vadd.xlane.f32.xlu1 %v1155_v47  ;;  %1131 = vadd.xlane.f32.xlu0 %v1130_v60  ;;  %v2180_v47 = vld [vmem:[#allocation7 + $0x8] sm:$0xff]  ;;  %v1209_v60 = vsel %vm572_vm0, %v443_v30, 0.0  ;;  %v1550_v30 = vrot.slane %v3302_v38, %v3098_v18 }
 0x129   :  { %v3326_v4 = vpop.xlane.xlu1 %861  ;;  %v3328_v35 = vpop.xlane.xlu0 %856  ;;  %v2531_v49 = vpack.c.bf16 %v2180_v47, %v2179_v44  ;;  %v1210_v59 = vadd.f32 %v1209_v60, %v1208_v43  ;;  %v2193_v43 = vld [vmem:[#allocation7 + $0x70] sm:$0xff]  ;;  %v2194_v44 = vld [vmem:[#allocation7 + $0x78] sm:$0xff] }
 0x12a   :  { %v1912_v19 = vsel %vm1863_vm1, %v1550_v30, %v1546_v50  ;;  %v2559_v6 = vpack.c.bf16 %v2194_v44, %v2193_v43  ;;  %v1582_v60 = vrot.slane %v3326_v4, %v3098_v18 }
 0x12b   :  { %2532 = vmatprep.subr.bf16.mxu0 %v2531_v49  ;;  %2563 = vmatprep.subr.bf16.mxu1 %v2531_v49  ;;  %v1913_v24 = vsel %vm1865_vm2, %v1554_v31, %v1912_v19 }
 0x12c   :  { %1161 = vadd.xlane.f32.xlu1 %v1160_v61  ;;  %1191 = vadd.xlane.f32.xlu0 %v1190_v63  ;;  %v2181_v61 = vld [vmem:[#allocation7 + $0x10] sm:$0xff]  ;;  %v1908_v63 = vsel %vm1869_vm4, %v1530_v0, %v1907_v56 }
 0x12d   :  { %v807_v7 = vpop.xlane.xlu1 %806  ;;  %v772_v46 = vpop.xlane.xlu0 %771  ;;  %2534 = vmatpush3.bf16.msra.mxu0 %v2531_v49  ;;  %v2535_v42 = vpack.c.bf16 %v2182_v45, %v2181_v61  ;;  %2571 = vmatpush3.bf16.msra.mxu1 %v2531_v49  ;;  %v1909_v1 = vsel %vm1871_vm5, %v1534_v53, %v1908_v63  ;;  %v1578_v49 = vrot.slane %v3328_v35, %v3098_v18 }
 0x12e   :  { %v1510_v36 = vrot.slane %v772_v46, %v3098_v18  ;;  %v1538_v25 = vrot.slane %v807_v7, %v3098_v18 }
 0x12f   :  { %2536 = vmatprep.subr.bf16.mxu0 %v2535_v42  ;;  %2564 = vmatprep.subr.bf16.mxu1 %v2535_v42  ;;  %v1919_v61 = vsel %vm1863_vm1, %v1582_v60, %v1578_v49 }
 0x130   :  { %1166 = vadd.xlane.f32.xlu1 %v1165_v16  ;;  %1196 = vadd.xlane.f32.xlu0 %v1195_v23  ;;  %v1904_v58 = vsel %vm1875_vm7, %v1510_v36, %v1903_v8  ;;  %v1910_v3 = vsel %vm1873_vm6, %v1538_v25, %v1909_v1  ;;  %v2187_v16 = vld [vmem:[#allocation7 + $0x40] sm:$0xff] }
 0x131   :  { %v3360_v12 = vpop.xlane.xlu1 %866  ;;  %2457 = vmatprep.mubr.msk.f32.mxu0 %vm1982_vm8, %v1904_v58  ;;  %v3363_v48 = vpop.xlane.xlu0 %831  ;;  %2572 = vmatpush3.bf16.msra.mxu1 %v2535_v42  ;;  %v2547_v20 = vpack.c.bf16 %v2188_v21, %v2187_v16  ;;  %v2191_v36 = vld [vmem:[#allocation7 + $0x60] sm:$0xff] }
 0x132   :  { %2538 = vmatpush3.bf16.msra.mxu0 %v2535_v42  ;;  %2565 = vmatprep.subr.bf16.mxu1 %v2539_v34  ;;  %v1558_v51 = vrot.slane %v3363_v48, %v3098_v18  ;;  %v1586_v54 = vrot.slane %v3360_v12, %v3098_v18 }
 0x133   :  { %2540 = vmatprep.subr.bf16.mxu0 %v2539_v34 }
 0x134   :  { %1171 = vadd.xlane.f32.xlu1 %v1170_v57  ;;  %1201 = vadd.xlane.f32.xlu0 %v1200_v39  ;;  %v2555_v39 = vpack.c.bf16 %v2192_v37, %v2191_v36  ;;  %v1914_v32 = vsel %vm1867_vm3, %v1558_v51, %v1913_v24  ;;  %v1920_v45 = vsel %vm1865_vm2, %v1586_v54, %v1919_v61 }
 0x135   :  { %v3374_v27 = vpop.xlane.xlu1 %836  ;;  %v812_v62 = vpop.xlane.xlu0 %811  ;;  %2573 = vmatpush3.bf16.msra.mxu1 %v2539_v34 }
 0x136   :  { %v1542_v2 = vrot.slane %v812_v62, %v3098_v18  ;;  %2542 = vmatpush3.bf16.msra.mxu0 %v2539_v34  ;;  %2566 = vmatprep.subr.bf16.mxu1 %v2543_v55  ;;  %v1562_v8 = vrot.slane %v3374_v27, %v3098_v18 }
 0x137   :  { %2544 = vmatprep.subr.bf16.mxu0 %v2543_v55 }
 0x138   :  { %1206 = vadd.xlane.f32.xlu0 %v1205_v17  ;;  %1211 = vadd.xlane.f32.xlu1 %v1210_v59  ;;  %v1911_v41 = vsel %vm1875_vm7, %v1542_v2, %v1910_v3  ;;  %v1915_v47 = vsel %vm1869_vm4, %v1562_v8, %v1914_v32 }
 0x139   :  { %v3380_v10 = vpop.xlane.xlu1 %841  ;;  %2458 = vmatmul.mubr.msk.f32.gmra.mrb[4].mxu0 %vm1982_vm8, %v1911_v41  ;;  %v3383_v11 = vpop.xlane.xlu0 %871  ;;  %2574 = vmatpush3.bf16.msra.mxu1 %v2543_v55 }
 0x13a   :  { %2546 = vmatpush3.bf16.msra.mxu0 %v2543_v55  ;;  %2567 = vmatprep.subr.bf16.mxu1 %v2547_v20  ;;  %v1566_v40 = vrot.slane %v3380_v10, %v3098_v18  ;;  %v1590_v56 = vrot.slane %v3383_v11, %v3098_v18 }
 0x13b   :  { %2548 = vmatprep.subr.bf16.mxu0 %v2547_v20 }
 0x13c   :  { %v1916_v52 = vsel %vm1871_vm5, %v1566_v40, %v1915_v47  ;;  %v1921_v27 = vsel %vm1867_vm3, %v1590_v56, %v1920_v45 }
 0x13d   :  { %v3385_v14 = vpop.xlane.xlu1 %896  ;;  %v3387_v15 = vpop.xlane.xlu0 %876  ;;  %2575 = vmatpush3.bf16.msra.mxu1 %v2547_v20 }
 0x13e   :  { %2550 = vmatpush3.bf16.msra.mxu0 %v2547_v20  ;;  %2568 = vmatprep.subr.bf16.mxu1 %v2551_v29  ;;  %v1594_v35 = vrot.slane %v3387_v15, %v3098_v18 }
 0x13f   :  { %2552 = vmatprep.subr.bf16.mxu0 %v2551_v29 }
 0x140   :  { %v1922_v62 = vsel %vm1869_vm4, %v1594_v35, %v1921_v27 }
 0x141   :  { %v847_v22 = vpop.xlane.xlu1 %846  ;;  %v3389_v23 = vpop.xlane.xlu0 %901  ;;  %2576 = vmatpush3.bf16.msra.mxu1 %v2551_v29 }
 0x142   :  { %2554 = vmatpush3.bf16.msra.mxu0 %v2551_v29  ;;  %v1570_v58 = vrot.slane %v847_v22, %v3098_v18  ;;  %2569 = vmatprep.subr.bf16.mxu1 %v2555_v39  ;;  %v1614_v16 = vrot.slane %v3389_v23, %v3098_v18  ;;  %v1610_v22 = vrot.slane %v3385_v14, %v3098_v18 }
 0x143   :  { %2556 = vmatprep.subr.bf16.mxu0 %v2555_v39 }
 0x144   :  { %v1917_v25 = vsel %vm1873_vm6, %v1570_v58, %v1916_v52  ;;  %v1926_v29 = vsel %vm1863_vm1, %v1614_v16, %v1610_v22 }
 0x145   :  { %v3391_v7 = vpop.xlane.xlu1 %906  ;;  %v882_v46 = vpop.xlane.xlu0 %881  ;;  %2577 = vmatpush3.bf16.msra.mxu1 %v2555_v39 }
 0x146   :  { %2558 = vmatpush3.bf16.msra.mxu0 %v2555_v39  ;;  %2570 = vmatprep.subr.bf16.mxu1 %v2559_v6  ;;  %v1598_v12 = vrot.slane %v882_v46, %v3098_v18  ;;  %v1618_v21 = vrot.slane %v3391_v7, %v3098_v18 }
 0x147   :  { %2560 = vmatprep.subr.bf16.mxu0 %v2559_v6 }
 0x148   :  { %v1923_v2 = vsel %vm1871_vm5, %v1598_v12, %v1922_v62  ;;  %v1927_v23 = vsel %vm1865_vm2, %v1618_v21, %v1926_v29 }
 0x149   :  { %v3403_v57 = vpop.xlane.xlu1 %941  ;;  %v3405_v38 = vpop.xlane.xlu0 %936  ;;  %2578 = vmatpush3.bf16.msra.mxu1 %v2559_v6 }
 0x14a   :  { %2562 = vmatpush3.bf16.msra.mxu0 %v2559_v6  ;;  %v1646_v36 = vrot.slane %v3403_v57, %v3098_v18  ;;  %v1642_v37 = vrot.slane %v3405_v38, %v3098_v18 }
 0x14c   :  { %v1933_v38 = vsel %vm1863_vm1, %v1646_v36, %v1642_v37 }
 0x14d   :  { %v887_v0 = vpop.xlane.xlu1 %886  ;;  %v852_v48 = vpop.xlane.xlu0 %851 }
 0x14e   :  { %v1574_v53 = vrot.slane %v852_v48, %v3098_v18  ;;  %v1602_v63 = vrot.slane %v887_v0, %v3098_v18 }
 0x150   :  { %v1918_v4 = vsel %vm1875_vm7, %v1574_v53, %v1917_v25  ;;  %v1924_v41 = vsel %vm1873_vm6, %v1602_v63, %v1923_v2 }
 0x151   :  { %v947_v17 = vpop.xlane.xlu1 %946  ;;  %2460 = vmatprep.mubr.msk.f32.mxu0 %vm1982_vm8, %v1918_v4  ;;  %v912_v59 = vpop.xlane.xlu0 %911 }
 0x152   :  { %v1622_v20 = vrot.slane %v912_v59, %v3098_v18  ;;  %v1650_v19 = vrot.slane %v947_v17, %v3098_v18 }
 0x154   :  { %v1928_v7 = vsel %vm1867_vm3, %v1622_v20, %v1927_v23  ;;  %v1934_v47 = vsel %vm1865_vm2, %v1650_v19, %v1933_v38 }
 0x155   :  { %v917_v42 = vpop.xlane.xlu1 %916  ;;  %v892_v1 = vpop.xlane.xlu0 %891 }
 0x156   :  { %v1606_v3 = vrot.slane %v892_v1, %v3098_v18  ;;  %v1626_v5 = vrot.slane %v917_v42, %v3098_v18 }
 0x158   :  { %v1925_v26 = vsel %vm1875_vm7, %v1606_v3, %v1924_v41  ;;  %v1929_v14 = vsel %vm1869_vm4, %v1626_v5, %v1928_v7 }
 0x159   :  { %v922_v9 = vpop.xlane.xlu1 %921  ;;  %2461 = vmatmul.mubr.msk.f32.gmra.mrb[6].mxu0 %vm1982_vm8, %v1925_v26  ;;  %v952_v10 = vpop.xlane.xlu0 %951 }
 0x15a   :  { %v1630_v30 = vrot.slane %v922_v9, %v3098_v18  ;;  %v1654_v24 = vrot.slane %v952_v10, %v3098_v18 }
 0x15c   :  { %v1930_v8 = vsel %vm1871_vm5, %v1630_v30, %v1929_v14  ;;  %v1935_v48 = vsel %vm1867_vm3, %v1654_v24, %v1934_v47 }
 0x15d   :  { %v3440_v11 = vpop.xlane.xlu1 %976  ;;  %v957_v34 = vpop.xlane.xlu0 %956 }
 0x15e   :  { %v1658_v32 = vrot.slane %v957_v34, %v3098_v18  ;;  %v1674_v62 = vrot.slane %v3440_v11, %v3098_v18 }
 0x160   :  { %v1936_v6 = vsel %vm1869_vm4, %v1658_v32, %v1935_v48 }
 0x161   :  { %v927_v33 = vpop.xlane.xlu1 %926  ;;  %v982_v13 = vpop.xlane.xlu0 %981 }
 0x162   :  { %v1634_v31 = vrot.slane %v927_v33, %v3098_v18  ;;  %v1678_v63 = vrot.slane %v982_v13, %v3098_v18 }
 0x164   :  { %v1931_v40 = vsel %vm1873_vm6, %v1634_v31, %v1930_v8  ;;  %v1940_v41 = vsel %vm1863_vm1, %v1678_v63, %v1674_v62 }
 0x165   :  { %v987_v15 = vpop.xlane.xlu1 %986  ;;  %v962_v55 = vpop.xlane.xlu0 %961 }
 0x166   :  { %v1662_v44 = vrot.slane %v962_v55, %v3098_v18  ;;  %v1682_v27 = vrot.slane %v987_v15, %v3098_v18 }
 0x168   :  { %v1937_v52 = vsel %vm1871_vm5, %v1662_v44, %v1936_v6  ;;  %v1941_v9 = vsel %vm1865_vm2, %v1682_v27, %v1940_v41 }
 0x169   :  { %v3450_v28 = vpop.xlane.xlu1 %1021  ;;  %v3452_v46 = vpop.xlane.xlu0 %1016 }
 0x16a   :  { %v1710_v15 = vrot.slane %v3450_v28, %v3098_v18  ;;  %v1706_v55 = vrot.slane %v3452_v46, %v3098_v18 }
 0x16c   :  { %v1947_v46 = vsel %vm1863_vm1, %v1710_v15, %v1706_v55 }
 0x16d   :  { %v967_v50 = vpop.xlane.xlu1 %966  ;;  %v932_v51 = vpop.xlane.xlu0 %931 }
 0x16e   :  { %v1638_v39 = vrot.slane %v932_v51, %v3098_v18  ;;  %v1666_v0 = vrot.slane %v967_v50, %v3098_v18 }
 0x170   :  { %v1932_v58 = vsel %vm1875_vm7, %v1638_v39, %v1931_v40  ;;  %v1938_v54 = vsel %vm1873_vm6, %v1666_v0, %v1937_v52 }
 0x171   :  { %v1027_v43 = vpop.xlane.xlu1 %1026  ;;  %2463 = vmatprep.mubr.msk.f32.mxu0 %vm1982_vm8, %v1932_v58  ;;  %v992_v57 = vpop.xlane.xlu0 %991 }
 0x172   :  { %v1686_v42 = vrot.slane %v992_v57, %v3098_v18  ;;  %v1714_v22 = vrot.slane %v1027_v43, %v3098_v18 }
 0x174   :  { %v1942_v34 = vsel %vm1867_vm3, %v1686_v42, %v1941_v9  ;;  %v1948_v7 = vsel %vm1865_vm2, %v1714_v22, %v1947_v46 }
 0x175   :  { %v997_v60 = vpop.xlane.xlu1 %996  ;;  %v972_v49 = vpop.xlane.xlu0 %971 }
 0x176   :  { %v1670_v53 = vrot.slane %v972_v49, %v3098_v18  ;;  %v1690_v1 = vrot.slane %v997_v60, %v3098_v18 }
 0x178   :  { %v1939_v25 = vsel %vm1875_vm7, %v1670_v53, %v1938_v54  ;;  %v1943_v11 = vsel %vm1869_vm4, %v1690_v1, %v1942_v34 }
 0x179   :  { %v1002_v56 = vpop.xlane.xlu1 %1001  ;;  %2464 = vmatmul.mubr.msk.f32.gmra.mrb[8].mxu0 %vm1982_vm8, %v1939_v25  ;;  %v1032_v4 = vpop.xlane.xlu0 %1031 }
 0x17a   :  { %v1694_v26 = vrot.slane %v1002_v56, %v3098_v18  ;;  %v1718_v5 = vrot.slane %v1032_v4, %v3098_v18 }
 0x17c   :  { %v1944_v16 = vsel %vm1871_vm5, %v1694_v26, %v1943_v11  ;;  %v1949_v50 = vsel %vm1867_vm3, %v1718_v5, %v1948_v7 }
 0x17d   :  { %v3483_v35 = vpop.xlane.xlu1 %1056  ;;  %v1037_v17 = vpop.xlane.xlu0 %1036 }
 0x17e   :  { %v1722_v30 = vrot.slane %v1037_v17, %v3098_v18  ;;  %v1738_v6 = vrot.slane %v3483_v35, %v3098_v18 }
 0x180   :  { %v1950_v51 = vsel %vm1869_vm4, %v1722_v30, %v1949_v50 }
 0x181   :  { %v1007_v59 = vpop.xlane.xlu1 %1006  ;;  %v1062_v61 = vpop.xlane.xlu0 %1061 }
 0x182   :  { %v1698_v10 = vrot.slane %v1007_v59, %v3098_v18  ;;  %v1742_v0 = vrot.slane %v1062_v61, %v3098_v18 }
 0x184   :  { %v1945_v20 = vsel %vm1873_vm6, %v1698_v10, %v1944_v16  ;;  %v1954_v54 = vsel %vm1863_vm1, %v1742_v0, %v1738_v6 }
 0x185   :  { %v1067_v12 = vpop.xlane.xlu1 %1066  ;;  %v1042_v45 = vpop.xlane.xlu0 %1041 }
 0x186   :  { %v1726_v31 = vrot.slane %v1042_v45, %v3098_v18  ;;  %v1746_v48 = vrot.slane %v1067_v12, %v3098_v18 }
 0x188   :  { %v1951_v8 = vsel %vm1871_vm5, %v1726_v31, %v1950_v51  ;;  %v1955_v56 = vsel %vm1865_vm2, %v1746_v48, %v1954_v54 }
 0x189   :  { %v3491_v2 = vpop.xlane.xlu1 %1101  ;;  %v3493_v3 = vpop.xlane.xlu0 %1096 }
 0x18a   :  { %v1774_v12 = vrot.slane %v3491_v2, %v3098_v18  ;;  %v1770_v45 = vrot.slane %v3493_v3, %v3098_v18 }
 0x18c   :  { %v1961_v3 = vsel %vm1863_vm1, %v1774_v12, %v1770_v45 }
 0x18d   :  { %v1047_v33 = vpop.xlane.xlu1 %1046  ;;  %v1012_v13 = vpop.xlane.xlu0 %1011 }
 0x18e   :  { %v1702_v21 = vrot.slane %v1012_v13, %v3098_v18  ;;  %v1730_v14 = vrot.slane %v1047_v33, %v3098_v18 }
 0x190   :  { %v1946_v29 = vsel %vm1875_vm7, %v1702_v21, %v1945_v20  ;;  %v1952_v19 = vsel %vm1873_vm6, %v1730_v14, %v1951_v8 }
 0x191   :  { %v1107_v23 = vpop.xlane.xlu1 %1106  ;;  %2466 = vmatprep.mubr.msk.f32.mxu0 %vm1982_vm8, %v1946_v29  ;;  %v1072_v28 = vpop.xlane.xlu0 %1071 }
 0x192   :  { %v1750_v60 = vrot.slane %v1072_v28, %v3098_v18  ;;  %v1778_v62 = vrot.slane %v1107_v23, %v3098_v18 }
 0x194   :  { %v1956_v17 = vsel %vm1867_vm3, %v1750_v60, %v1955_v56  ;;  %v1962_v34 = vsel %vm1865_vm2, %v1778_v62, %v1961_v3 }
 0x195   :  { %v1077_v36 = vpop.xlane.xlu1 %1076  ;;  %v1052_v37 = vpop.xlane.xlu0 %1051 }
 0x196   :  { %v1734_v39 = vrot.slane %v1052_v37, %v3098_v18  ;;  %v1754_v49 = vrot.slane %v1077_v36, %v3098_v18 }
 0x198   :  { %v1953_v40 = vsel %vm1875_vm7, %v1734_v39, %v1952_v19  ;;  %v1957_v59 = vsel %vm1869_vm4, %v1754_v49, %v1956_v17 }
 0x199   :  { %v1082_v24 = vpop.xlane.xlu1 %1081  ;;  %2467 = vmatmul.mubr.msk.f32.gmra.mrb[10].mxu0 %vm1982_vm8, %v1953_v40  ;;  %v1112_v58 = vpop.xlane.xlu0 %1111 }
 0x19a   :  { %v1758_v25 = vrot.slane %v1082_v24, %v3098_v18  ;;  %v1782_v1 = vrot.slane %v1112_v58, %v3098_v18 }
 0x19c   :  { %v1958_v63 = vsel %vm1871_vm5, %v1758_v25, %v1957_v59  ;;  %v1963_v33 = vsel %vm1867_vm3, %v1782_v1, %v1962_v34 }
 0x19d   :  { %v1137_v32 = vpop.xlane.xlu1 %1136  ;;  %v1117_v43 = vpop.xlane.xlu0 %1116 }
 0x19e   :  { %v1786_v26 = vrot.slane %v1117_v43, %v3098_v18  ;;  %v1802_v28 = vrot.slane %v1137_v32, %v3098_v18 }
 0x1a0   :  { %v1964_v13 = vsel %vm1869_vm4, %v1786_v26, %v1963_v33 }
 0x1a1   :  { %v1087_v57 = vpop.xlane.xlu1 %1086  ;;  %v1142_v38 = vpop.xlane.xlu0 %1141 }
 0x1a2   :  { %v1762_v4 = vrot.slane %v1087_v57, %v3098_v18  ;;  %v1806_v30 = vrot.slane %v1142_v38, %v3098_v18 }
 0x1a4   :  { %v1959_v42 = vsel %vm1873_vm6, %v1762_v4, %v1958_v63  ;;  %v1968_v50 = vsel %vm1863_vm1, %v1806_v30, %v1802_v28 }
 0x1a5   :  { %v1147_v44 = vpop.xlane.xlu1 %1146  ;;  %v1122_v47 = vpop.xlane.xlu0 %1121 }
 0x1a6   :  { %v1790_v10 = vrot.slane %v1122_v47, %v3098_v18  ;;  %v1810_v23 = vrot.slane %v1147_v44, %v3098_v18 }
 0x1a8   :  { %v1965_v16 = vsel %vm1871_vm5, %v1790_v10, %v1964_v13  ;;  %v1969_v36 = vsel %vm1865_vm2, %v1810_v23, %v1968_v50 }
 0x1a9   :  { %v1182_v52 = vpop.xlane.xlu1 %1181  ;;  %v1177_v53 = vpop.xlane.xlu0 %1176 }
 0x1aa   :  { %v1838_v37 = vrot.slane %v1182_v52, %v3098_v18  ;;  %v1834_v8 = vrot.slane %v1177_v53, %v3098_v18 }
 0x1ac   :  { %v1975_v47 = vsel %vm1863_vm1, %v1838_v37, %v1834_v8 }
 0x1ad   :  { %v1127_v61 = vpop.xlane.xlu1 %1126  ;;  %v1092_v35 = vpop.xlane.xlu0 %1091 }
 0x1ae   :  { %v1766_v27 = vrot.slane %v1092_v35, %v3098_v18  ;;  %v1794_v11 = vrot.slane %v1127_v61, %v3098_v18  ;;  %v2381_v61 = vld [vmem:[%s3614_s2] ss:$0 sm:$0xff] }
 0x1b0   :  { %v1960_v41 = vsel %vm1875_vm7, %v1766_v27, %v1959_v42  ;;  %v1966_v22 = vsel %vm1873_vm6, %v1794_v11, %v1965_v16 }
 0x1b1   :  { %v1187_v9 = vpop.xlane.xlu1 %1186  ;;  %2469 = vmatprep.mubr.msk.f32.mxu0 %vm1982_vm8, %v1960_v41  ;;  %v1152_v2 = vpop.xlane.xlu0 %1151 }
 0x1b2   :  { %v1814_v46 = vrot.slane %v1152_v2, %v3098_v18  ;;  %v1842_v19 = vrot.slane %v1187_v9, %v3098_v18 }
 0x1b4   :  { %v1970_v40 = vsel %vm1867_vm3, %v1814_v46, %v1969_v36  ;;  %v1976_v6 = vsel %vm1865_vm2, %v1842_v19, %v1975_v47 }
 0x1b5   :  { %v1157_v15 = vpop.xlane.xlu1 %1156  ;;  %v1132_v55 = vpop.xlane.xlu0 %1131 }
 0x1b6   :  { %v1798_v21 = vrot.slane %v1132_v55, %v3098_v18  ;;  %v1818_v31 = vrot.slane %v1157_v15, %v3098_v18 }
 0x1b8   :  { %v1967_v20 = vsel %vm1875_vm7, %v1798_v21, %v1966_v22  ;;  %v1971_v24 = vsel %vm1869_vm4, %v1818_v31, %v1970_v40 }
 0x1b9   :  { %v1162_v5 = vpop.xlane.xlu1 %1161  ;;  %2470 = vmatmul.mubr.msk.f32.gmra.mrb[12].mxu0 %vm1982_vm8, %v1967_v20  ;;  %v1192_v29 = vpop.xlane.xlu0 %1191 }
 0x1ba   :  { %v1822_v51 = vrot.slane %v1162_v5, %v3098_v18  ;;  %v1846_v58 = vrot.slane %v1192_v29, %v3098_v18 }
 0x1bc   :  { %v1972_v57 = vsel %vm1871_vm5, %v1822_v51, %v1971_v24  ;;  %v1977_v49 = vsel %vm1867_vm3, %v1846_v58, %v1976_v6 }
 0x1bd   :  { %v1167_v7 = vpop.xlane.xlu1 %1166  ;;  %v1197_v14 = vpop.xlane.xlu0 %1196 }
 0x1be   :  { %v1826_v39 = vrot.slane %v1167_v7, %v3098_v18  ;;  %v1850_v38 = vrot.slane %v1197_v14, %v3098_v18 }
 0x1c0   :  { %v1973_v0 = vsel %vm1873_vm6, %v1826_v39, %v1972_v57  ;;  %v1978_v54 = vsel %vm1869_vm4, %v1850_v38, %v1977_v49 }
 0x1c1   :  { %v1172_v32 = vpop.xlane.xlu1 %1171  ;;  %v1202_v43 = vpop.xlane.xlu0 %1201 }
 0x1c2   :  { %v1830_v44 = vrot.slane %v1172_v32, %v3098_v18  ;;  %v1854_v48 = vrot.slane %v1202_v43, %v3098_v18 }
 0x1c4   :  { %v1974_v60 = vsel %vm1875_vm7, %v1830_v44, %v1973_v0  ;;  %v1979_v4 = vsel %vm1871_vm5, %v1854_v48, %v1978_v54  ;;  %v2399_v44 = vld [vmem:[%s3616_s4] ss:$0 sm:$0xff]  ;;  %s2812_s4 = smov [#allocation8]  }
 0x1c5   :  { %2472 = vmatprep.mubr.msk.f32.mxu0 %vm1982_vm8, %v1974_v60  ;;  %v1207_v52 = vpop.xlane.xlu0 %1206  ;;  %v1212_v53 = vpop.xlane.xlu1 %1211  ;;  %s2368_s6 = sshll.u32 %s2812_s4, 4  ;;  %s2369_s6 = int_to_ptr.vmem [resolvable:$true] %s2368_s6 }
 0x1c6   :  { %v1858_v25 = vrot.slane %v1207_v52, %v3098_v18  ;;  %v1862_v56 = vrot.slane %v1212_v53, %v3098_v18  ;;  %s2779_s7 = scalar_lea.vmem %s2369_s6, 2048  ;;  %p2784_p11 = scmp.lt.s32.totalorder %s2369_s6, %s2369_s6 }
 0x1c7   :  { %p2780_p10 = scmp.ne.s32.totalorder %s2369_s6, %s2779_s7  ;;  %p2785_p12 = scmp.lt.s32.totalorder %s2779_s7, %s2779_s7 }
 0x1c8   :  { %v1980_v17 = vsel %vm1873_vm6, %v1858_v25, %v1979_v4 }
 0x1c9   :  { %v1981_v59 = vsel %vm1875_vm7, %v1862_v56, %v1980_v17  ;;  %p2786_p13 = por %p2785_p12, %p2784_p11 }
 0x1ca   :  { %2473 = vmatmul.mubr.msk.f32.gmra.mrb[14].mxu0 %vm1982_vm8, %v1981_v59 }
 0x1cb   :  { %p2787_p0 = pnand %p2786_p13, %p2780_p10 }
 0x1cc   :  { %v2453_v35 = vpop.f32.mrb[0].mxu0 }
 0x1cd   :  { %v2090_v12 = vadd.f32 %v2453_v35, %v2381_v61  ;;  %v2084_v45 = vpop.f32.mrb[1].mxu0 }
 0x1ce   :  { %v2085_v63 = vadd.f32 %v2381_v61, %v2084_v45 }
 0x1cf   :  { %v2164_v62 = vmax.f32 %v2090_v12, 0.0 }
 0x1d0   :  { %v2163_v27 = vmax.f32 %v2085_v63, 0.0 }
 0x1d2   :  { %2507 = vmatprep.mubr.f32.mxu0 %v2163_v27 }
 0x1d3   :  { %2508 = vmatmul.mubr.f32.vlgmr.msra.gmra.mrb[16].mxu0 %v2164_v62 }
 0x1ec   :  { %v2456_v18 = vpop.f32.mrb[2].mxu0 }
 0x1ed   :  { %v2100_v42 = vadd.f32 %v2456_v18, %v2381_v61  ;;  %v2094_v1 = vpop.f32.mrb[3].mxu0 }
 0x1ee   :  { %v2095_v41 = vadd.f32 %v2381_v61, %v2094_v1 }
 0x1ef   :  { %v2166_v9 = vmax.f32 %v2100_v42, 0.0 }
 0x1f0   :  { %v2165_v26 = vmax.f32 %v2095_v41, 0.0 }
 0x1f2   :  { %2510 = vmatprep.mubr.f32.mxu0 %v2165_v26 }
 0x1f3   :  { %2511 = vmatmul.mubr.f32.gmra.mrb[18].mxu0 %v2166_v9 }
 0x20c   :  { %v2459_v2 = vpop.f32.mrb[4].mxu0 }
 0x20d   :  { %v2110_v3 = vadd.f32 %v2459_v2, %v2381_v61  ;;  %v2104_v10 = vpop.f32.mrb[5].mxu0 }
 0x20e   :  { %v2105_v34 = vadd.f32 %v2381_v61, %v2104_v10 }
 0x20f   :  { %v2168_v33 = vmax.f32 %v2110_v3, 0.0 }
 0x210   :  { %v2167_v11 = vmax.f32 %v2105_v34, 0.0 }
 0x212   :  { %2513 = vmatprep.mubr.f32.mxu0 %v2167_v11 }
 0x213   :  { %2514 = vmatmul.mubr.f32.gmra.mrb[20].mxu0 %v2168_v33 }
 0x22c   :  { %v2462_v13 = vpop.f32.mrb[6].mxu0 }
 0x22d   :  { %v2120_v15 = vadd.f32 %v2462_v13, %v2381_v61  ;;  %v2114_v55 = vpop.f32.mrb[7].mxu0 }
 0x22e   :  { %v2115_v16 = vadd.f32 %v2381_v61, %v2114_v55 }
 0x22f   :  { %v2170_v22 = vmax.f32 %v2120_v15, 0.0 }
 0x230   :  { %v2169_v21 = vmax.f32 %v2115_v16, 0.0 }
 0x232   :  { %2516 = vmatprep.mubr.f32.mxu1 %v2169_v21 }
 0x233   :  { %2517 = vmatmul.mubr.f32.vlgmr.msra.gmra.mrb[0].mxu1 %v2170_v22 }
 0x24c   :  { %v2465_v20 = vpop.f32.mrb[8].mxu0 }
 0x24d   :  { %v2130_v5 = vadd.f32 %v2465_v20, %v2381_v61  ;;  %v2124_v29 = vpop.f32.mrb[9].mxu0 }
 0x24e   :  { %v2125_v30 = vadd.f32 %v2381_v61, %v2124_v29 }
 0x24f   :  { %v2172_v28 = vmax.f32 %v2130_v5, 0.0 }
 0x250   :  { %v2171_v23 = vmax.f32 %v2125_v30, 0.0 }
 0x252   :  { %2519 = vmatprep.mubr.f32.mxu1 %v2171_v23 }
 0x253   :  { %2520 = vmatmul.mubr.f32.gmra.mrb[2].mxu1 %v2172_v28 }
 0x26c   :  { %v2468_v46 = vpop.f32.mrb[10].mxu0 }
 0x26d   :  { %v2140_v31 = vadd.f32 %v2468_v46, %v2381_v61  ;;  %v2134_v7 = vpop.f32.mrb[11].mxu0 }
 0x26e   :  { %v2135_v14 = vadd.f32 %v2381_v61, %v2134_v7 }
 0x26f   :  { %v2174_v51 = vmax.f32 %v2140_v31, 0.0 }
 0x270   :  { %v2173_v50 = vmax.f32 %v2135_v14, 0.0 }
 0x272   :  { %2522 = vmatprep.mubr.f32.mxu1 %v2173_v50 }
 0x273   :  { %2523 = vmatmul.mubr.f32.gmra.mrb[4].mxu1 %v2174_v51 }
 0x28c   :  { %v2471_v36 = vpop.f32.mrb[12].mxu0 }
 0x28d   :  { %v2150_v37 = vadd.f32 %v2471_v36, %v2381_v61  ;;  %v2144_v8 = vpop.f32.mrb[13].mxu0 }
 0x28e   :  { %v2145_v39 = vadd.f32 %v2381_v61, %v2144_v8 }
 0x28f   :  { %v2176_v40 = vmax.f32 %v2150_v37, 0.0 }
 0x290   :  { %v2175_v19 = vmax.f32 %v2145_v39, 0.0 }
 0x292   :  { %2525 = vmatprep.mubr.f32.mxu1 %v2175_v19 }
 0x293   :  { %2526 = vmatmul.mubr.f32.gmra.mrb[6].mxu1 %v2176_v40 }
 0x29d   :  { %v2474_v24 = vpop.f32.mrb[14].mxu0 }
 0x29e   :  { %v2160_v58 = vadd.f32 %v2474_v24, %v2381_v61  ;;  %v2154_v32 = vpop.f32.mrb[15].mxu0 }
 0x29f   :  { %v2155_v43 = vadd.f32 %v2381_v61, %v2154_v32 }
 0x2a0   :  { %v2178_v38 = vmax.f32 %v2160_v58, 0.0 }
 0x2a1   :  { %v2177_v57 = vmax.f32 %v2155_v43, 0.0 }
 0x2a3   :  { %2528 = vmatprep.mubr.f32.mxu1 %v2177_v57 }
 0x2a4   :  { %2529 = vmatmul.mubr.f32.gmra.mrb[8].mxu1 %v2178_v38 }
 0x2a6   :  { %v2509_v47 = vpop.f32.mrb[16].mxu0 }
 0x2a7   :  { %v2274_v0 = vadd.f32 %v2509_v47, %v2399_v44  ;;  %v2268_v48 = vpop.f32.mrb[17].mxu0 }
 0x2a8   :  { %v2269_v6 = vadd.f32 %v2399_v44, %v2268_v48 }
 0x2a9   :  { %2348 = vst [vmem:[#allocation8 + $0x8] sm:$0xff] %v2274_v0 }
 0x2aa   :  { %2347 = vst [vmem:[#allocation8] sm:$0xff] %v2269_v6 }
 0x2c6   :  { %v2512_v60 = vpop.f32.mrb[18].mxu0 }
 0x2c7   :  { %v2284_v49 = vadd.f32 %v2512_v60, %v2399_v44  ;;  %v2278_v52 = vpop.f32.mrb[19].mxu0 }
 0x2c8   :  { %v2279_v53 = vadd.f32 %v2399_v44, %v2278_v52 }
 0x2c9   :  { %2350 = vst [vmem:[#allocation8 + $0x18] sm:$0xff] %v2284_v49 }
 0x2ca   :  { %2349 = vst [vmem:[#allocation8 + $0x10] sm:$0xff] %v2279_v53 }
 0x2e6   :  { %v2515_v54 = vpop.f32.mrb[20].mxu0 }
 0x2e7   :  { %v2294_v25 = vadd.f32 %v2515_v54, %v2399_v44  ;;  %v2288_v56 = vpop.f32.mrb[21].mxu0 }
 0x2e8   :  { %v2289_v4 = vadd.f32 %v2399_v44, %v2288_v56 }
 0x2e9   :  { %2352 = vst [vmem:[#allocation8 + $0x28] sm:$0xff] %v2294_v25 }
 0x2ea   :  { %2351 = vst [vmem:[#allocation8 + $0x20] sm:$0xff] %v2289_v4 }
 0x306   :  { %v2518_v17 = vpop.f32.mrb[0].mxu1 }
 0x307   :  { %v2304_v59 = vadd.f32 %v2518_v17, %v2399_v44  ;;  %v2298_v61 = vpop.f32.mrb[1].mxu1 }
 0x308   :  { %v2299_v35 = vadd.f32 %v2399_v44, %v2298_v61 }
 0x309   :  { %2354 = vst [vmem:[#allocation8 + $0x38] sm:$0xff] %v2304_v59 }
 0x30a   :  { %2353 = vst [vmem:[#allocation8 + $0x30] sm:$0xff] %v2299_v35 }
 0x326   :  { %v2521_v12 = vpop.f32.mrb[2].mxu1 }
 0x327   :  { %v2314_v45 = vadd.f32 %v2521_v12, %v2399_v44  ;;  %v2308_v63 = vpop.f32.mrb[3].mxu1 }
 0x328   :  { %v2309_v27 = vadd.f32 %v2399_v44, %v2308_v63 }
 0x329   :  { %2356 = vst [vmem:[#allocation8 + $0x48] sm:$0xff] %v2314_v45 }
 0x32a   :  { %2355 = vst [vmem:[#allocation8 + $0x40] sm:$0xff] %v2309_v27 }
 0x346   :  { %v2524_v62 = vpop.f32.mrb[4].mxu1 }
 0x347   :  { %v2324_v18 = vadd.f32 %v2524_v62, %v2399_v44  ;;  %v2318_v42 = vpop.f32.mrb[5].mxu1 }
 0x348   :  { %v2319_v1 = vadd.f32 %v2399_v44, %v2318_v42 }
 0x349   :  { %2358 = vst [vmem:[#allocation8 + $0x58] sm:$0xff] %v2324_v18 }
 0x34a   :  { %2357 = vst [vmem:[#allocation8 + $0x50] sm:$0xff] %v2319_v1 }
 0x366   :  { %v2527_v41 = vpop.f32.mrb[6].mxu1 }
 0x367   :  { %v2334_v26 = vadd.f32 %v2527_v41, %v2399_v44  ;;  %v2328_v9 = vpop.f32.mrb[7].mxu1 }
 0x368   :  { %v2329_v2 = vadd.f32 %v2399_v44, %v2328_v9 }
 0x369   :  { %2360 = vst [vmem:[#allocation8 + $0x68] sm:$0xff] %v2334_v26 }
 0x36a   :  { %2359 = vst [vmem:[#allocation8 + $0x60] sm:$0xff] %v2329_v2 }
 0x377   :  { %v2530_v3 = vpop.f32.mrb[8].mxu1 }
 0x378   :  { %v2344_v10 = vadd.f32 %v2530_v3, %v2399_v44  ;;  %v2338_v34 = vpop.f32.mrb[9].mxu1 }
 0x379   :  { %v2339_v11 = vadd.f32 %v2399_v44, %v2338_v34 }
 0x37a   :  { %2362 = vst [vmem:[#allocation8 + $0x78] sm:$0xff] %v2344_v10 }
 0x37b   :  { %2361 = vst [vmem:[#allocation8 + $0x70] sm:$0xff] %v2339_v11 }
 0x37c   :  { %2790 = shalt.err (!%p2787_p0)
}
 0x37d   :  { %s2791_s10 = scalar_lea.hbm %s3617_s5, 2048 }
 0x37e   :  { %p2792_p1 = scmp.ne.s32.totalorder %s3617_s5, %s2791_s10  ;;  %p2795_p2 = scmp.lt.u32.totalorder %s2791_s10, %s3617_s5 }
 0x380   :  { %p2797_p3 = pnand %p2795_p2, %p2792_p1 }
 0x382   :  { %2800 = shalt.err (!%p2797_p3)
}
 0x383   :  { %2374 = dma.vmem_to_hbm [thread:$0]  %s2369_s6, 2048, %s3617_s5, [#allocation4], %s2809_s1, %s2809_s1, %s2810_s15  }
 0x384   :  { %2805 = dma.done.wait [#allocation4], 2048  }
 0x385   :  { %2806 = vsyncadd [#allocation4], 4294965248 }
 0x386   :  { %2378 = vsyncpa [#allocation3], 1 }
 0x387   :  { %2379 = vsyncpa [#allocation6], 1 }
 0x388   :  { %2380 = vsyncpa [#allocation4], 1 }

</bundles_post_ra>
